<compile_context>
chip_gen: v7x
topology: tpu7x:2x2x1
jax: 0.10.0
libtpu: 0.0.40
codegen_flags: <defaults>
</compile_context>

<pallas_src>
import jax
import jax.numpy as jnp
from jax.experimental import pallas as pl
from jax.experimental.pallas import tpu as pltpu

# Synthesized module configuration.
IN_C = 4
OUT_C = 8
KH = KW = 3
H = W = 16
NUM_CLASSES = 10
NCP = 128                       # class axis padded to a full lane tile
HP, WP = H + 2, W + 2           # spatially zero-padded dims (padding=1)
KLANES = 128                    # conv contraction (WP*IN_C = 72) padded to 128
LIN_D = OUT_C * H * W           # 2048


# ---------------------------------------------------------------------------
# Fused kernel for one batch block of TB images.
#   xp_ref : (HP*TB, KLANES)        bf16  padded input, rows ordered (row, n)
#   bdw_ref: (KH, KLANES, W*OUT_C)  bf16  banded conv weights (kw + C folded, K padded)
#   cb_ref : (1, W*OUT_C)           f32   conv bias tiled over w
#   wl_ref : (H, W*OUT_C, NCP)      bf16  linear weight permuted to (h, (w,oc), nc)
#   lb_ref : (1, NCP)               f32   linear bias, padded classes = -1e30
#   out_ref: (TB, NCP)              f32   softmax probabilities (padded lanes -> 0)
# ---------------------------------------------------------------------------
def _fused_cnn_kernel(xp_ref, bdw_ref, cb_ref, wl_ref, lb_ref, out_ref):
    tb = out_ref.shape[0]

    # ---- conv + bias + ReLU: 3 shift-and-accumulate matmuls, M = H*TB -------
    # acc row (h*tb + n) = conv activation for image n, output row h,
    # lanes ordered (w, oc).
    acc = jnp.zeros((H * tb, W * OUT_C), jnp.float32)
    for kh in range(KH):
        lhs = xp_ref[kh * tb : kh * tb + H * tb, :]          # (H*tb, 128) bf16
        acc = acc + jnp.dot(lhs, bdw_ref[kh],
                            preferred_element_type=jnp.float32)
    act = jnp.maximum(acc + cb_ref[...], 0.0).astype(jnp.bfloat16)

    # ---- linear: H matmuls with M = TB over the activation rows -------------
    logits = jnp.zeros((tb, NCP), jnp.float32)
    for h in range(H):
        logits = logits + jnp.dot(act[h * tb:(h + 1) * tb, :], wl_ref[h],
                                  preferred_element_type=jnp.float32)
    logits = logits + lb_ref[...]

    # ---- softmax over the (padded) class axis (f32 element-wise) ------------
    m = jnp.max(logits, axis=-1, keepdims=True)
    e = jnp.exp(logits - m)
    s = jnp.sum(e, axis=-1, keepdims=True)
    out_ref[...] = (e / s).astype(out_ref.dtype)


# ---------------------------------------------------------------------------
# One-time parameter preparation (trace-time weight permutes / padding).
# ---------------------------------------------------------------------------
def prepare_params(params):
    conv_w = params["conv_w"].astype(jnp.float32)   # (OUT_C, IN_C, KH, KW)
    conv_b = params["conv_b"].astype(jnp.float32)   # (OUT_C,)
    lin_w = params["lin_w"].astype(jnp.float32)     # (NUM_CLASSES, LIN_D)
    lin_b = params["lin_b"].astype(jnp.float32)     # (NUM_CLASSES,)

    # Banded conv weight: bdw[kh, j*C + c, w*OC + oc] = conv_w[oc, c, kh, j - w]
    # (zero when j - w outside [0, KW)).  Folds the kw taps + input-channel
    # contraction into one K-dim so the conv is one matmul per kh tap.
    j = jnp.arange(WP)[:, None, None]
    w = jnp.arange(W)[None, :, None]
    k = jnp.arange(KW)[None, None, :]
    sel = (j - w == k).astype(jnp.float32)                     # (WP, W, KW)
    bdw = jnp.einsum("jwk,ochk->hjcwo", sel, conv_w)           # (KH, WP, C, W, OC)
    bdw = bdw.reshape(KH, WP * IN_C, W * OUT_C)
    bdw = jnp.pad(bdw, ((0, 0), (0, KLANES - WP * IN_C), (0, 0)))  # K: 72 -> 128
    bdw = bdw.astype(jnp.bfloat16)

    # Conv bias broadcast over w (lane order is (w, oc)).
    cb = jnp.tile(conv_b, W).reshape(1, W * OUT_C)

    # Linear weight permuted to the kernel's activation order
    #   wl[h, w*OC + oc, nc] = lin_w[nc, oc*H*W + h*W + w]
    # and padded to NCP classes (zeros) so rhs / output stores are lane dense.
    wl = lin_w.reshape(NUM_CLASSES, OUT_C, H, W)
    wl = jnp.transpose(wl, (2, 3, 1, 0)).reshape(H, W * OUT_C, NUM_CLASSES)
    wl = jnp.pad(wl, ((0, 0), (0, 0), (0, NCP - NUM_CLASSES))).astype(jnp.bfloat16)

    # Linear bias; padded classes get -1e30 so they softmax to exactly 0.
    lb = jnp.concatenate(
        [lin_b, jnp.full((NCP - NUM_CLASSES,), -1e30, jnp.float32)]
    ).reshape(1, NCP)

    return {"bdw": bdw, "cb": cb, "wl": wl, "lb": lb}


# ---------------------------------------------------------------------------
# Public forward pass.
# ---------------------------------------------------------------------------
@jax.jit
def cnn_forward(x_nchw, prepared):
    n = x_nchw.shape[0]
    # Batch tile: multiple of 16 (bf16 sublane alignment of the in-kernel row
    # slices), capped at 256 (fills the 256-tall MXU on v6e/v7x, ~few MB VMEM).
    tb = min(256, pl.cdiv(max(n, 1), 16) * 16)
    n_pad = pl.cdiv(n, tb) * tb

    # Pad batch + spatial (padding=1), lay out lanes as (col, c), pad K to 128,
    # then interleave rows batch-minor per block:
    #   xp[(blk*HP + row)*tb + n_local, col*IN_C + c] = x_padded[blk*tb+n_local, c, row, col]
    xp = jnp.pad(x_nchw.astype(jnp.float32),
                 ((0, n_pad - n), (0, 0), (1, 1), (1, 1)))       # (n_pad, C, HP, WP)
    xp = jnp.transpose(xp, (0, 2, 3, 1)).reshape(n_pad, HP, WP * IN_C)
    xp = jnp.pad(xp, ((0, 0), (0, 0), (0, KLANES - WP * IN_C)))
    xp = xp.reshape(n_pad // tb, tb, HP, KLANES).transpose(0, 2, 1, 3)
    xp = xp.reshape(n_pad * HP, KLANES).astype(jnp.bfloat16)

    out = pl.pallas_call(
        _fused_cnn_kernel,
        out_shape=jax.ShapeDtypeStruct((n_pad, NCP), jnp.float32),
        grid_spec=pltpu.PrefetchScalarGridSpec(
            num_scalar_prefetch=0,
            grid=(n_pad // tb,),
            in_specs=[
                pl.BlockSpec((HP * tb, KLANES), lambda i: (i, 0)),
                pl.BlockSpec((KH, KLANES, W * OUT_C), lambda i: (0, 0, 0)),
                pl.BlockSpec((1, W * OUT_C), lambda i: (0, 0)),
                pl.BlockSpec((H, W * OUT_C, NCP), lambda i: (0, 0, 0)),
                pl.BlockSpec((1, NCP), lambda i: (0, 0)),
            ],
            out_specs=pl.BlockSpec((tb, NCP), lambda i: (i, 0)),
        ),
        compiler_params=pltpu.CompilerParams(
            dimension_semantics=("parallel",)),
    )(xp, prepared["bdw"], prepared["cb"], prepared["wl"], prepared["lb"])
    return out[:n, :NUM_CLASSES]


# ---------------------------------------------------------------------------
# Plain-JAX reference (f32) for correctness checking.
# ---------------------------------------------------------------------------
def cnn_forward_ref(x_nchw, params):
    conv = jax.lax.conv_general_dilated(
        x_nchw.astype(jnp.float32), params["conv_w"].astype(jnp.float32),
        window_strides=(1, 1), padding="SAME",
        dimension_numbers=("NCHW", "OIHW", "NCHW"))
    conv = jnp.maximum(conv + params["conv_b"][None, :, None, None], 0.0)
    lin_in = conv.reshape(x_nchw.shape[0], -1)
    logits = lin_in @ params["lin_w"].T + params["lin_b"]
    return jax.nn.softmax(logits, axis=-1)


if __name__ == "__main__":
    key = jax.random.PRNGKey(0)
    kx, kcw, kcb, klw, klb = jax.random.split(key, 5)

    N = 2
    x = jax.random.normal(kx, (N, IN_C, H, W), dtype=jnp.float32)
    params = {
        "conv_w": 0.1 * jax.random.normal(kcw, (OUT_C, IN_C, KH, KW), jnp.float32),
        "conv_b": 0.1 * jax.random.normal(kcb, (OUT_C,), jnp.float32),
        "lin_w": 0.05 * jax.random.normal(klw, (NUM_CLASSES, LIN_D), jnp.float32),
        "lin_b": 0.05 * jax.random.normal(klb, (NUM_CLASSES,), jnp.float32),
    }

    prepared = prepare_params(params)
    out = jax.block_until_ready(cnn_forward(x, prepared))
    ref = jax.block_until_ready(cnn_forward_ref(x, params))

    assert out.shape == (N, NUM_CLASSES)
    # Exact softmax normalization (f32); bf16 matmul operands loosen the
    # element-wise comparison against the f32 reference.
    assert jnp.allclose(jnp.sum(out, axis=-1), 1.0, atol=1e-3)
    assert jnp.allclose(out, ref, atol=2e-2, rtol=2e-2)
    print("KERNEL_OK")
</pallas_src>

<mosaic_0001>
module attributes {stable_mosaic.version = 11 : i64} {
  func.func @_fused_cnn_kernel(%arg0: i32, %arg1: memref<288x128xbf16, #tpu.memory_space<vmem>>, %arg2: memref<3x128x128xbf16, #tpu.memory_space<vmem>>, %arg3: memref<1x128xf32, #tpu.memory_space<vmem>>, %arg4: memref<16x128x128xbf16, #tpu.memory_space<vmem>>, %arg5: memref<1x128xf32, #tpu.memory_space<vmem>>, %arg6: memref<16x128xf32, #tpu.memory_space<vmem>>) attributes {dimension_semantics = [#tpu.dimension_semantics<parallel>], iteration_bounds = array<i64: 1>, scalar_prefetch = 0 : i64, scratch_operands = 0 : i64, tpu.core_type = #tpu.core_type<tc>, window_params = [{transform_indices = @transform_0, window_bounds = array<i64: 288, 128>}, {pipeline_mode = #tpu.pipeline_mode<synchronous>, transform_indices = @transform_1, window_bounds = array<i64: 3, 128, 128>}, {pipeline_mode = #tpu.pipeline_mode<synchronous>, transform_indices = @transform_2, window_bounds = array<i64: 1, 128>}, {pipeline_mode = #tpu.pipeline_mode<synchronous>, transform_indices = @transform_3, window_bounds = array<i64: 16, 128, 128>}, {pipeline_mode = #tpu.pipeline_mode<synchronous>, transform_indices = @transform_4, window_bounds = array<i64: 1, 128>}, {transform_indices = @transform_5, window_bounds = array<i64: 16, 128>}]} {
    %cst = arith.constant 0.000000e+00 : f32
    %0 = vector.broadcast %cst : f32 to vector<256x128xf32>
    %c0 = arith.constant 0 : index
    %c0_0 = arith.constant 0 : index
    %1 = vector.load %arg1[%c0, %c0_0] : memref<288x128xbf16, #tpu.memory_space<vmem>>, vector<256x128xbf16>
    %c0_1 = arith.constant 0 : index
    %c0_2 = arith.constant 0 : index
    %c0_3 = arith.constant 0 : index
    %2 = vector.load %arg2[%c0_1, %c0_2, %c0_3] : memref<3x128x128xbf16, #tpu.memory_space<vmem>>, vector<1x128x128xbf16>
    %3 = vector.shape_cast %2 : vector<1x128x128xbf16> to vector<128x128xbf16>
    %cst_4 = arith.constant dense<0.000000e+00> : vector<256x128xf32>
    %4 = tpu.matmul %1, %3, %cst_4 {dimension_numbers = #tpu.dot_dimension_numbers<[1], [0], [0], [1], [0, 0, 1, 1], [], []>} : vector<256x128xbf16>, vector<128x128xbf16>, vector<256x128xf32> -> vector<256x128xf32>
    %5 = arith.addf %0, %4 : vector<256x128xf32>
    %c16 = arith.constant 16 : index
    %c0_5 = arith.constant 0 : index
    %6 = vector.load %arg1[%c16, %c0_5] : memref<288x128xbf16, #tpu.memory_space<vmem>>, vector<256x128xbf16>
    %c1 = arith.constant 1 : index
    %c0_6 = arith.constant 0 : index
    %c0_7 = arith.constant 0 : index
    %7 = vector.load %arg2[%c1, %c0_6, %c0_7] : memref<3x128x128xbf16, #tpu.memory_space<vmem>>, vector<1x128x128xbf16>
    %8 = vector.shape_cast %7 : vector<1x128x128xbf16> to vector<128x128xbf16>
    %cst_8 = arith.constant dense<0.000000e+00> : vector<256x128xf32>
    %9 = tpu.matmul %6, %8, %cst_8 {dimension_numbers = #tpu.dot_dimension_numbers<[1], [0], [0], [1], [0, 0, 1, 1], [], []>} : vector<256x128xbf16>, vector<128x128xbf16>, vector<256x128xf32> -> vector<256x128xf32>
    %10 = arith.addf %5, %9 : vector<256x128xf32>
    %c32 = arith.constant 32 : index
    %c0_9 = arith.constant 0 : index
    %11 = vector.load %arg1[%c32, %c0_9] : memref<288x128xbf16, #tpu.memory_space<vmem>>, vector<256x128xbf16>
    %c2 = arith.constant 2 : index
    %c0_10 = arith.constant 0 : index
    %c0_11 = arith.constant 0 : index
    %12 = vector.load %arg2[%c2, %c0_10, %c0_11] : memref<3x128x128xbf16, #tpu.memory_space<vmem>>, vector<1x128x128xbf16>
    %13 = vector.shape_cast %12 : vector<1x128x128xbf16> to vector<128x128xbf16>
    %cst_12 = arith.constant dense<0.000000e+00> : vector<256x128xf32>
    %14 = tpu.matmul %11, %13, %cst_12 {dimension_numbers = #tpu.dot_dimension_numbers<[1], [0], [0], [1], [0, 0, 1, 1], [], []>} : vector<256x128xbf16>, vector<128x128xbf16>, vector<256x128xf32> -> vector<256x128xf32>
    %15 = arith.addf %10, %14 : vector<256x128xf32>
    %c0_13 = arith.constant 0 : index
    %c0_14 = arith.constant 0 : index
    %16 = vector.load %arg3[%c0_13, %c0_14] : memref<1x128xf32, #tpu.memory_space<vmem>>, vector<1x128xf32>
    %17 = vector.broadcast %16 : vector<1x128xf32> to vector<256x128xf32>
    %18 = arith.addf %15, %17 : vector<256x128xf32>
    %cst_15 = arith.constant 0.000000e+00 : f32
    %19 = vector.broadcast %cst_15 : f32 to vector<256x128xf32>
    %20 = arith.maximumf %18, %19 : vector<256x128xf32>
    %21 = arith.truncf %20 : vector<256x128xf32> to vector<256x128xbf16>
    %cst_16 = arith.constant 0.000000e+00 : f32
    %22 = vector.broadcast %cst_16 : f32 to vector<16x128xf32>
    %23 = vector.extract_strided_slice %21 {offsets = [0, 0], sizes = [16, 128], strides = [1, 1]} : vector<256x128xbf16> to vector<16x128xbf16>
    %c0_17 = arith.constant 0 : index
    %c0_18 = arith.constant 0 : index
    %c0_19 = arith.constant 0 : index
    %24 = vector.load %arg4[%c0_17, %c0_18, %c0_19] : memref<16x128x128xbf16, #tpu.memory_space<vmem>>, vector<1x128x128xbf16>
    %25 = vector.shape_cast %24 : vector<1x128x128xbf16> to vector<128x128xbf16>
    %cst_20 = arith.constant dense<0.000000e+00> : vector<16x128xf32>
    %26 = tpu.matmul %23, %25, %cst_20 {dimension_numbers = #tpu.dot_dimension_numbers<[1], [0], [0], [1], [0, 0, 1, 1], [], []>} : vector<16x128xbf16>, vector<128x128xbf16>, vector<16x128xf32> -> vector<16x128xf32>
    %27 = arith.addf %22, %26 : vector<16x128xf32>
    %28 = vector.extract_strided_slice %21 {offsets = [16, 0], sizes = [16, 128], strides = [1, 1]} : vector<256x128xbf16> to vector<16x128xbf16>
    %c1_21 = arith.constant 1 : index
    %c0_22 = arith.constant 0 : index
    %c0_23 = arith.constant 0 : index
    %29 = vector.load %arg4[%c1_21, %c0_22, %c0_23] : memref<16x128x128xbf16, #tpu.memory_space<vmem>>, vector<1x128x128xbf16>
    %30 = vector.shape_cast %29 : vector<1x128x128xbf16> to vector<128x128xbf16>
    %cst_24 = arith.constant dense<0.000000e+00> : vector<16x128xf32>
    %31 = tpu.matmul %28, %30, %cst_24 {dimension_numbers = #tpu.dot_dimension_numbers<[1], [0], [0], [1], [0, 0, 1, 1], [], []>} : vector<16x128xbf16>, vector<128x128xbf16>, vector<16x128xf32> -> vector<16x128xf32>
    %32 = arith.addf %27, %31 : vector<16x128xf32>
    %33 = vector.extract_strided_slice %21 {offsets = [32, 0], sizes = [16, 128], strides = [1, 1]} : vector<256x128xbf16> to vector<16x128xbf16>
    %c2_25 = arith.constant 2 : index
    %c0_26 = arith.constant 0 : index
    %c0_27 = arith.constant 0 : index
    %34 = vector.load %arg4[%c2_25, %c0_26, %c0_27] : memref<16x128x128xbf16, #tpu.memory_space<vmem>>, vector<1x128x128xbf16>
    %35 = vector.shape_cast %34 : vector<1x128x128xbf16> to vector<128x128xbf16>
    %cst_28 = arith.constant dense<0.000000e+00> : vector<16x128xf32>
    %36 = tpu.matmul %33, %35, %cst_28 {dimension_numbers = #tpu.dot_dimension_numbers<[1], [0], [0], [1], [0, 0, 1, 1], [], []>} : vector<16x128xbf16>, vector<128x128xbf16>, vector<16x128xf32> -> vector<16x128xf32>
    %37 = arith.addf %32, %36 : vector<16x128xf32>
    %38 = vector.extract_strided_slice %21 {offsets = [48, 0], sizes = [16, 128], strides = [1, 1]} : vector<256x128xbf16> to vector<16x128xbf16>
    %c3 = arith.constant 3 : index
    %c0_29 = arith.constant 0 : index
    %c0_30 = arith.constant 0 : index
    %39 = vector.load %arg4[%c3, %c0_29, %c0_30] : memref<16x128x128xbf16, #tpu.memory_space<vmem>>, vector<1x128x128xbf16>
    %40 = vector.shape_cast %39 : vector<1x128x128xbf16> to vector<128x128xbf16>
    %cst_31 = arith.constant dense<0.000000e+00> : vector<16x128xf32>
    %41 = tpu.matmul %38, %40, %cst_31 {dimension_numbers = #tpu.dot_dimension_numbers<[1], [0], [0], [1], [0, 0, 1, 1], [], []>} : vector<16x128xbf16>, vector<128x128xbf16>, vector<16x128xf32> -> vector<16x128xf32>
    %42 = arith.addf %37, %41 : vector<16x128xf32>
    %43 = vector.extract_strided_slice %21 {offsets = [64, 0], sizes = [16, 128], strides = [1, 1]} : vector<256x128xbf16> to vector<16x128xbf16>
    %c4 = arith.constant 4 : index
    %c0_32 = arith.constant 0 : index
    %c0_33 = arith.constant 0 : index
    %44 = vector.load %arg4[%c4, %c0_32, %c0_33] : memref<16x128x128xbf16, #tpu.memory_space<vmem>>, vector<1x128x128xbf16>
    %45 = vector.shape_cast %44 : vector<1x128x128xbf16> to vector<128x128xbf16>
    %cst_34 = arith.constant dense<0.000000e+00> : vector<16x128xf32>
    %46 = tpu.matmul %43, %45, %cst_34 {dimension_numbers = #tpu.dot_dimension_numbers<[1], [0], [0], [1], [0, 0, 1, 1], [], []>} : vector<16x128xbf16>, vector<128x128xbf16>, vector<16x128xf32> -> vector<16x128xf32>
    %47 = arith.addf %42, %46 : vector<16x128xf32>
    %48 = vector.extract_strided_slice %21 {offsets = [80, 0], sizes = [16, 128], strides = [1, 1]} : vector<256x128xbf16> to vector<16x128xbf16>
    %c5 = arith.constant 5 : index
    %c0_35 = arith.constant 0 : index
    %c0_36 = arith.constant 0 : index
    %49 = vector.load %arg4[%c5, %c0_35, %c0_36] : memref<16x128x128xbf16, #tpu.memory_space<vmem>>, vector<1x128x128xbf16>
    %50 = vector.shape_cast %49 : vector<1x128x128xbf16> to vector<128x128xbf16>
    %cst_37 = arith.constant dense<0.000000e+00> : vector<16x128xf32>
    %51 = tpu.matmul %48, %50, %cst_37 {dimension_numbers = #tpu.dot_dimension_numbers<[1], [0], [0], [1], [0, 0, 1, 1], [], []>} : vector<16x128xbf16>, vector<128x128xbf16>, vector<16x128xf32> -> vector<16x128xf32>
    %52 = arith.addf %47, %51 : vector<16x128xf32>
    %53 = vector.extract_strided_slice %21 {offsets = [96, 0], sizes = [16, 128], strides = [1, 1]} : vector<256x128xbf16> to vector<16x128xbf16>
    %c6 = arith.constant 6 : index
    %c0_38 = arith.constant 0 : index
    %c0_39 = arith.constant 0 : index
    %54 = vector.load %arg4[%c6, %c0_38, %c0_39] : memref<16x128x128xbf16, #tpu.memory_space<vmem>>, vector<1x128x128xbf16>
    %55 = vector.shape_cast %54 : vector<1x128x128xbf16> to vector<128x128xbf16>
    %cst_40 = arith.constant dense<0.000000e+00> : vector<16x128xf32>
    %56 = tpu.matmul %53, %55, %cst_40 {dimension_numbers = #tpu.dot_dimension_numbers<[1], [0], [0], [1], [0, 0, 1, 1], [], []>} : vector<16x128xbf16>, vector<128x128xbf16>, vector<16x128xf32> -> vector<16x128xf32>
    %57 = arith.addf %52, %56 : vector<16x128xf32>
    %58 = vector.extract_strided_slice %21 {offsets = [112, 0], sizes = [16, 128], strides = [1, 1]} : vector<256x128xbf16> to vector<16x128xbf16>
    %c7 = arith.constant 7 : index
    %c0_41 = arith.constant 0 : index
    %c0_42 = arith.constant 0 : index
    %59 = vector.load %arg4[%c7, %c0_41, %c0_42] : memref<16x128x128xbf16, #tpu.memory_space<vmem>>, vector<1x128x128xbf16>
    %60 = vector.shape_cast %59 : vector<1x128x128xbf16> to vector<128x128xbf16>
    %cst_43 = arith.constant dense<0.000000e+00> : vector<16x128xf32>
    %61 = tpu.matmul %58, %60, %cst_43 {dimension_numbers = #tpu.dot_dimension_numbers<[1], [0], [0], [1], [0, 0, 1, 1], [], []>} : vector<16x128xbf16>, vector<128x128xbf16>, vector<16x128xf32> -> vector<16x128xf32>
    %62 = arith.addf %57, %61 : vector<16x128xf32>
    %63 = vector.extract_strided_slice %21 {offsets = [128, 0], sizes = [16, 128], strides = [1, 1]} : vector<256x128xbf16> to vector<16x128xbf16>
    %c8 = arith.constant 8 : index
    %c0_44 = arith.constant 0 : index
    %c0_45 = arith.constant 0 : index
    %64 = vector.load %arg4[%c8, %c0_44, %c0_45] : memref<16x128x128xbf16, #tpu.memory_space<vmem>>, vector<1x128x128xbf16>
    %65 = vector.shape_cast %64 : vector<1x128x128xbf16> to vector<128x128xbf16>
    %cst_46 = arith.constant dense<0.000000e+00> : vector<16x128xf32>
    %66 = tpu.matmul %63, %65, %cst_46 {dimension_numbers = #tpu.dot_dimension_numbers<[1], [0], [0], [1], [0, 0, 1, 1], [], []>} : vector<16x128xbf16>, vector<128x128xbf16>, vector<16x128xf32> -> vector<16x128xf32>
    %67 = arith.addf %62, %66 : vector<16x128xf32>
    %68 = vector.extract_strided_slice %21 {offsets = [144, 0], sizes = [16, 128], strides = [1, 1]} : vector<256x128xbf16> to vector<16x128xbf16>
    %c9 = arith.constant 9 : index
    %c0_47 = arith.constant 0 : index
    %c0_48 = arith.constant 0 : index
    %69 = vector.load %arg4[%c9, %c0_47, %c0_48] : memref<16x128x128xbf16, #tpu.memory_space<vmem>>, vector<1x128x128xbf16>
    %70 = vector.shape_cast %69 : vector<1x128x128xbf16> to vector<128x128xbf16>
    %cst_49 = arith.constant dense<0.000000e+00> : vector<16x128xf32>
    %71 = tpu.matmul %68, %70, %cst_49 {dimension_numbers = #tpu.dot_dimension_numbers<[1], [0], [0], [1], [0, 0, 1, 1], [], []>} : vector<16x128xbf16>, vector<128x128xbf16>, vector<16x128xf32> -> vector<16x128xf32>
    %72 = arith.addf %67, %71 : vector<16x128xf32>
    %73 = vector.extract_strided_slice %21 {offsets = [160, 0], sizes = [16, 128], strides = [1, 1]} : vector<256x128xbf16> to vector<16x128xbf16>
    %c10 = arith.constant 10 : index
    %c0_50 = arith.constant 0 : index
    %c0_51 = arith.constant 0 : index
    %74 = vector.load %arg4[%c10, %c0_50, %c0_51] : memref<16x128x128xbf16, #tpu.memory_space<vmem>>, vector<1x128x128xbf16>
    %75 = vector.shape_cast %74 : vector<1x128x128xbf16> to vector<128x128xbf16>
    %cst_52 = arith.constant dense<0.000000e+00> : vector<16x128xf32>
    %76 = tpu.matmul %73, %75, %cst_52 {dimension_numbers = #tpu.dot_dimension_numbers<[1], [0], [0], [1], [0, 0, 1, 1], [], []>} : vector<16x128xbf16>, vector<128x128xbf16>, vector<16x128xf32> -> vector<16x128xf32>
    %77 = arith.addf %72, %76 : vector<16x128xf32>
    %78 = vector.extract_strided_slice %21 {offsets = [176, 0], sizes = [16, 128], strides = [1, 1]} : vector<256x128xbf16> to vector<16x128xbf16>
    %c11 = arith.constant 11 : index
    %c0_53 = arith.constant 0 : index
    %c0_54 = arith.constant 0 : index
    %79 = vector.load %arg4[%c11, %c0_53, %c0_54] : memref<16x128x128xbf16, #tpu.memory_space<vmem>>, vector<1x128x128xbf16>
    %80 = vector.shape_cast %79 : vector<1x128x128xbf16> to vector<128x128xbf16>
    %cst_55 = arith.constant dense<0.000000e+00> : vector<16x128xf32>
    %81 = tpu.matmul %78, %80, %cst_55 {dimension_numbers = #tpu.dot_dimension_numbers<[1], [0], [0], [1], [0, 0, 1, 1], [], []>} : vector<16x128xbf16>, vector<128x128xbf16>, vector<16x128xf32> -> vector<16x128xf32>
    %82 = arith.addf %77, %81 : vector<16x128xf32>
    %83 = vector.extract_strided_slice %21 {offsets = [192, 0], sizes = [16, 128], strides = [1, 1]} : vector<256x128xbf16> to vector<16x128xbf16>
    %c12 = arith.constant 12 : index
    %c0_56 = arith.constant 0 : index
    %c0_57 = arith.constant 0 : index
    %84 = vector.load %arg4[%c12, %c0_56, %c0_57] : memref<16x128x128xbf16, #tpu.memory_space<vmem>>, vector<1x128x128xbf16>
    %85 = vector.shape_cast %84 : vector<1x128x128xbf16> to vector<128x128xbf16>
    %cst_58 = arith.constant dense<0.000000e+00> : vector<16x128xf32>
    %86 = tpu.matmul %83, %85, %cst_58 {dimension_numbers = #tpu.dot_dimension_numbers<[1], [0], [0], [1], [0, 0, 1, 1], [], []>} : vector<16x128xbf16>, vector<128x128xbf16>, vector<16x128xf32> -> vector<16x128xf32>
    %87 = arith.addf %82, %86 : vector<16x128xf32>
    %88 = vector.extract_strided_slice %21 {offsets = [208, 0], sizes = [16, 128], strides = [1, 1]} : vector<256x128xbf16> to vector<16x128xbf16>
    %c13 = arith.constant 13 : index
    %c0_59 = arith.constant 0 : index
    %c0_60 = arith.constant 0 : index
    %89 = vector.load %arg4[%c13, %c0_59, %c0_60] : memref<16x128x128xbf16, #tpu.memory_space<vmem>>, vector<1x128x128xbf16>
    %90 = vector.shape_cast %89 : vector<1x128x128xbf16> to vector<128x128xbf16>
    %cst_61 = arith.constant dense<0.000000e+00> : vector<16x128xf32>
    %91 = tpu.matmul %88, %90, %cst_61 {dimension_numbers = #tpu.dot_dimension_numbers<[1], [0], [0], [1], [0, 0, 1, 1], [], []>} : vector<16x128xbf16>, vector<128x128xbf16>, vector<16x128xf32> -> vector<16x128xf32>
    %92 = arith.addf %87, %91 : vector<16x128xf32>
    %93 = vector.extract_strided_slice %21 {offsets = [224, 0], sizes = [16, 128], strides = [1, 1]} : vector<256x128xbf16> to vector<16x128xbf16>
    %c14 = arith.constant 14 : index
    %c0_62 = arith.constant 0 : index
    %c0_63 = arith.constant 0 : index
    %94 = vector.load %arg4[%c14, %c0_62, %c0_63] : memref<16x128x128xbf16, #tpu.memory_space<vmem>>, vector<1x128x128xbf16>
    %95 = vector.shape_cast %94 : vector<1x128x128xbf16> to vector<128x128xbf16>
    %cst_64 = arith.constant dense<0.000000e+00> : vector<16x128xf32>
    %96 = tpu.matmul %93, %95, %cst_64 {dimension_numbers = #tpu.dot_dimension_numbers<[1], [0], [0], [1], [0, 0, 1, 1], [], []>} : vector<16x128xbf16>, vector<128x128xbf16>, vector<16x128xf32> -> vector<16x128xf32>
    %97 = arith.addf %92, %96 : vector<16x128xf32>
    %98 = vector.extract_strided_slice %21 {offsets = [240, 0], sizes = [16, 128], strides = [1, 1]} : vector<256x128xbf16> to vector<16x128xbf16>
    %c15 = arith.constant 15 : index
    %c0_65 = arith.constant 0 : index
    %c0_66 = arith.constant 0 : index
    %99 = vector.load %arg4[%c15, %c0_65, %c0_66] : memref<16x128x128xbf16, #tpu.memory_space<vmem>>, vector<1x128x128xbf16>
    %100 = vector.shape_cast %99 : vector<1x128x128xbf16> to vector<128x128xbf16>
    %cst_67 = arith.constant dense<0.000000e+00> : vector<16x128xf32>
    %101 = tpu.matmul %98, %100, %cst_67 {dimension_numbers = #tpu.dot_dimension_numbers<[1], [0], [0], [1], [0, 0, 1, 1], [], []>} : vector<16x128xbf16>, vector<128x128xbf16>, vector<16x128xf32> -> vector<16x128xf32>
    %102 = arith.addf %97, %101 : vector<16x128xf32>
    %c0_68 = arith.constant 0 : index
    %c0_69 = arith.constant 0 : index
    %103 = vector.load %arg5[%c0_68, %c0_69] : memref<1x128xf32, #tpu.memory_space<vmem>>, vector<1x128xf32>
    %104 = vector.broadcast %103 : vector<1x128xf32> to vector<16x128xf32>
    %105 = arith.addf %102, %104 : vector<16x128xf32>
    %cst_70 = arith.constant dense<0xFF800000> : vector<16xf32>
    %106 = vector.multi_reduction <maximumf>, %105, %cst_70 [1] : vector<16x128xf32> to vector<16xf32>
    %107 = vector.shape_cast %106 : vector<16xf32> to vector<16x1xf32>
    %108 = vector.broadcast %107 : vector<16x1xf32> to vector<16x128xf32>
    %109 = arith.subf %105, %108 : vector<16x128xf32>
    %110 = math.exp %109 : vector<16x128xf32>
    %cst_71 = arith.constant dense<0.000000e+00> : vector<16xf32>
    %111 = vector.multi_reduction <add>, %110, %cst_71 [1] : vector<16x128xf32> to vector<16xf32>
    %112 = vector.shape_cast %111 : vector<16xf32> to vector<16x1xf32>
    %113 = vector.broadcast %112 : vector<16x1xf32> to vector<16x128xf32>
    %114 = arith.divf %110, %113 : vector<16x128xf32>
    %c0_72 = arith.constant 0 : index
    %c0_73 = arith.constant 0 : index
    %115 = vector.load %arg6[%c0_72, %c0_73] : memref<16x128xf32, #tpu.memory_space<vmem>>, vector<16x128xf32>
    tpu.vector_store %arg6[%c0_72, %c0_73], %114 {strides = array<i32>} : memref<16x128xf32, #tpu.memory_space<vmem>>, vector<16x128xf32>,
    return
  }
  func.func @transform_0(%arg0: i32) -> (i32, i32) {
    %c0_i32 = arith.constant 0 : i32
    %c0_i32_0 = arith.constant 0 : i32
    return %arg0, %c0_i32 : i32, i32
  }
  func.func @transform_1(%arg0: i32) -> (i32, i32, i32) {
    %c0_i32 = arith.constant 0 : i32
    %c0_i32_0 = arith.constant 0 : i32
    %c0_i32_1 = arith.constant 0 : i32
    %c0_i32_2 = arith.constant 0 : i32
    return %c0_i32, %c0_i32_0, %c0_i32_1 : i32, i32, i32
  }
  func.func @transform_2(%arg0: i32) -> (i32, i32) {
    %c0_i32 = arith.constant 0 : i32
    %c0_i32_0 = arith.constant 0 : i32
    %c0_i32_1 = arith.constant 0 : i32
    return %c0_i32, %c0_i32_0 : i32, i32
  }
  func.func @transform_3(%arg0: i32) -> (i32, i32, i32) {
    %c0_i32 = arith.constant 0 : i32
    %c0_i32_0 = arith.constant 0 : i32
    %c0_i32_1 = arith.constant 0 : i32
    %c0_i32_2 = arith.constant 0 : i32
    return %c0_i32, %c0_i32_0, %c0_i32_1 : i32, i32, i32
  }
  func.func @transform_4(%arg0: i32) -> (i32, i32) {
    %c0_i32 = arith.constant 0 : i32
    %c0_i32_0 = arith.constant 0 : i32
    %c0_i32_1 = arith.constant 0 : i32
    return %c0_i32, %c0_i32_0 : i32, i32
  }
  func.func @transform_5(%arg0: i32) -> (i32, i32) {
    %c0_i32 = arith.constant 0 : i32
    %c0_i32_0 = arith.constant 0 : i32
    return %arg0, %c0_i32 : i32, i32
  }
}

</mosaic_0001>

<bundles_post_ra>
// kernel: cnn_forward.1
= control target key start
LH: loop header
LB: loop body
LE: loop exit
PB: predicated region body
PF: predicated region fallthrough
CT: control target
= control target key end

     0   :  { %v4235_v34 = vmov 0.0   ;;  %vm4236_vm0 = vmmov 0   ;;  %s5142_s1 = inlined_call_operand.vmem [shape: bf16[3,128,128], index: 1, kind: input, shape index: {}]   ;;  %s5143_s0 = inlined_call_operand.vmem [shape: bf16[288,128], index: 0, kind: input, shape index: {}]   ;;  %s5144_s3 = inlined_call_operand.vmem [shape: bf16[16,128,128], index: 3, kind: input, shape index: {}]   ;;  %s5145_s2 = inlined_call_operand.vmem [shape: f32[1,128], index: 2, kind: input, shape index: {}]   ;;  %s5146_s4 = inlined_call_operand.vmem [shape: f32[1,128], index: 4, kind: input, shape index: {}]   ;;  %s5147_s5 = inlined_call_operand.vmem [shape: f32[16,128], index: 5, kind: output, shape index: {}]  }
   0x1   :  { %v4042_v0 = vld [vmem:[%s5142_s1 + $0x40] sm:$0xff]   ;;  %v4043_v1 = vld [vmem:[%s5142_s1 + $0x48] sm:$0xff]   ;;  %v4044_v2 = vld [vmem:[%s5142_s1 + $0x50] sm:$0xff]   ;;  %3656 = vmatprep.subr.bf16.mxu1 %v4235_v34  ;;  %3672 = vmatprep.mubr.msk.bf16.mxu1 %vm4236_vm0, %v4235_v34 }
   0x2   :  { %3512 = vmatprep.subr.bf16.mxu0 %v4042_v0  ;;  %v4045_v3 = vld [vmem:[%s5142_s1 + $0x58] sm:$0xff]   ;;  %v4282_v4 = vld [vmem:[%s5143_s0 + $0x8] sm:$0xff]   ;;  %v4046_v5 = vld [vmem:[%s5142_s1 + $0x60] sm:$0xff]  }
   0x3   :  { %3513 = vmatpush3.bf16.msra.mxu0 %v4042_v0  ;;  %3528 = vmatprep.mubr.bf16.mxu0 %v4282_v4  ;;  %v4047_v6 = vld [vmem:[%s5142_s1 + $0x68] sm:$0xff]   ;;  %v4048_v7 = vld [vmem:[%s5142_s1 + $0x70] sm:$0xff]   ;;  %v4049_v8 = vld [vmem:[%s5142_s1 + $0x78] sm:$0xff]  }
   0x4   :  { %3514 = vmatprep.subr.bf16.mxu0 %v4043_v1  ;;  %v4052_v9 = vld [vmem:[%s5142_s1] sm:$0xff]   ;;  %v4303_v10 = vld [vmem:[%s5143_s0 + $0x10] sm:$0xff]   ;;  %v4308_v11 = vld [vmem:[%s5143_s0 + $0x18] sm:$0xff]  }
   0x5   :  { %v4055_v12 = vld [vmem:[%s5142_s1 + $0x8] sm:$0xff]   ;;  %v4058_v13 = vld [vmem:[%s5142_s1 + $0x10] sm:$0xff]   ;;  %v4321_v14 = vld [vmem:[%s5143_s0 + $0x20] sm:$0xff]  }
   0x6   :  { %v4326_v15 = vld [vmem:[%s5143_s0 + $0x28] sm:$0xff]   ;;  %v4061_v16 = vld [vmem:[%s5142_s1 + $0x18] sm:$0xff]   ;;  %v4336_v17 = vld [vmem:[%s5143_s0 + $0x30] sm:$0xff]  }
   0x7   :  { %3515 = vmatpush3.bf16.msra.mxu0 %v4043_v1  ;;  %v4064_v18 = vld [vmem:[%s5142_s1 + $0x20] sm:$0xff]   ;;  %v4344_v19 = vld [vmem:[%s5143_s0 + $0x38] sm:$0xff]   ;;  %v4067_v20 = vld [vmem:[%s5142_s1 + $0x28] sm:$0xff]  }
   0x8   :  { %3516 = vmatprep.subr.bf16.mxu0 %v4044_v2  ;;  %v4070_v21 = vld [vmem:[%s5142_s1 + $0x30] sm:$0xff]   ;;  %v4357_v22 = vld [vmem:[%s5143_s0 + $0x40] sm:$0xff]   ;;  %v4362_v23 = vld [vmem:[%s5143_s0 + $0x48] sm:$0xff]  }
   0x9   :  { %v4073_v24 = vld [vmem:[%s5142_s1 + $0x38] sm:$0xff]   ;;  %v4075_v25 = vld [vmem:[%s5142_s1 + $0x80] sm:$0xff]   ;;  %v4375_v26 = vld [vmem:[%s5143_s0 + $0x50] sm:$0xff]  }
   0xa   :  { %v4380_v27 = vld [vmem:[%s5143_s0 + $0x58] sm:$0xff]   ;;  %v4387_v28 = vld [vmem:[%s5143_s0 + $0x60] sm:$0xff]   ;;  %v4392_v29 = vld [vmem:[%s5143_s0 + $0x68] sm:$0xff]  }
   0xb   :  { %3517 = vmatpush3.bf16.msra.mxu0 %v4044_v2  ;;  %v4399_v30 = vld [vmem:[%s5143_s0 + $0x70] sm:$0xff]   ;;  %v4404_v31 = vld [vmem:[%s5143_s0 + $0x78] sm:$0xff]   ;;  %v4072_v32 = vld [vmem:[%s5143_s0 + $0x80] sm:$0xff]  }
   0xc   :  { %3518 = vmatprep.subr.bf16.mxu0 %v4045_v3  ;;  %v4074_v33 = vld [vmem:[%s5143_s0] sm:$0xff]   ;;  %v4100_v36 = vld [vmem:[%s5144_s3 + $0x48] sm:$0xff]   ;;  %v4101_v38 = vld [vmem:[%s5144_s3 + $0x50] sm:$0xff]  }
   0xd   :  { %v4099_v35 = vld [vmem:[%s5144_s3 + $0x40] sm:$0xff]   ;;  %v4076_v37 = vld [vmem:[%s5142_s1 + $0x88] sm:$0xff]   ;;  %v4077_v39 = vld [vmem:[%s5142_s1 + $0x90] sm:$0xff]  }
   0xe   :  { %3657 = vmatpush3.bf16.msra.mxu1 %v4099_v35  ;;  %v4102_v40 = vld [vmem:[%s5144_s3 + $0x58] sm:$0xff]   ;;  %v4103_v42 = vld [vmem:[%s5144_s3 + $0x60] sm:$0xff]   ;;  %v4104_v44 = vld [vmem:[%s5144_s3 + $0x68] sm:$0xff]  }
   0xf   :  { %3519 = vmatpush3.bf16.msra.mxu0 %v4045_v3  ;;  %3658 = vmatprep.subr.bf16.mxu1 %v4235_v34  ;;  %v4078_v41 = vld [vmem:[%s5142_s1 + $0x98] sm:$0xff]   ;;  %v4079_v43 = vld [vmem:[%s5142_s1 + $0xa0] sm:$0xff]   ;;  %v4080_v45 = vld [vmem:[%s5142_s1 + $0xa8] sm:$0xff]  }
  0x10   :  { %3520 = vmatprep.subr.bf16.mxu0 %v4046_v5  ;;  %v4081_v46 = vld [vmem:[%s5142_s1 + $0xb0] sm:$0xff]   ;;  %v4082_v47 = vld [vmem:[%s5142_s1 + $0xb8] sm:$0xff]   ;;  %v4085_v50 = vld [vmem:[%s5143_s0 + $0x20] sm:$0xff]  }
  0x11   :  { %v4083_v48 = vld [vmem:[%s5143_s0 + $0x10] sm:$0xff]   ;;  %v4084_v49 = vld [vmem:[%s5143_s0 + $0x18] sm:$0xff]   ;;  %v4086_v51 = vld [vmem:[%s5143_s0 + $0x28] sm:$0xff]  }
  0x12   :  { %3659 = vmatpush3.bf16.msra.mxu1 %v4100_v36  ;;  %v4087_v52 = vld [vmem:[%s5143_s0 + $0x30] sm:$0xff]   ;;  %v4088_v53 = vld [vmem:[%s5143_s0 + $0x38] sm:$0xff]   ;;  %v4089_v54 = vld [vmem:[%s5143_s0 + $0x40] sm:$0xff]  }
  0x13   :  { %3521 = vmatpush3.bf16.msra.mxu0 %v4046_v5  ;;  %3660 = vmatprep.subr.bf16.mxu1 %v4235_v34  ;;  %v4090_v55 = vld [vmem:[%s5143_s0 + $0x48] sm:$0xff]   ;;  %v4091_v56 = vld [vmem:[%s5143_s0 + $0x50] sm:$0xff]   ;;  %v4092_v57 = vld [vmem:[%s5143_s0 + $0x58] sm:$0xff]  }
  0x14   :  { %3522 = vmatprep.subr.bf16.mxu0 %v4047_v6  ;;  %v4093_v58 = vld [vmem:[%s5143_s0 + $0x60] sm:$0xff]   ;;  %v4094_v59 = vld [vmem:[%s5143_s0 + $0x68] sm:$0xff]   ;;  %v4095_v60 = vld [vmem:[%s5143_s0 + $0x70] sm:$0xff]  }
  0x15   :  { %v4096_v61 = vld [vmem:[%s5143_s0 + $0x78] sm:$0xff]   ;;  %v4097_v62 = vld [vmem:[%s5143_s0 + $0x80] sm:$0xff]   ;;  %v4098_v63 = vld [vmem:[%s5143_s0 + $0x88] sm:$0xff]  }
  0x16   :  { %3661 = vmatpush3.bf16.msra.mxu1 %v4101_v38  ;;  %v4105_v0 = vld [vmem:[%s5144_s3 + $0x70] sm:$0xff]   ;;  %v4106_v1 = vld [vmem:[%s5144_s3 + $0x180] sm:$0xff]   ;;  %v4107_v2 = vld [vmem:[%s5144_s3 + $0x78] sm:$0xff]  }
  0x17   :  { %3523 = vmatpush3.bf16.msra.mxu0 %v4047_v6  ;;  %3662 = vmatprep.subr.bf16.mxu1 %v4235_v34  ;;  %v4108_v3 = vld [vmem:[%s5144_s3 + $0x188] sm:$0xff]   ;;  %v4112_v5 = vld [vmem:[%s5144_s3 + $0x198] sm:$0xff]   ;;  %v4114_v6 = vld [vmem:[%s5144_s3 + $0x1a0] sm:$0xff]  }
  0x18   :  { %3524 = vmatprep.subr.bf16.mxu0 %v4048_v7 }
  0x1a   :  { %3663 = vmatpush3.bf16.msra.mxu1 %v4102_v40  ;;  %v4113_v40 = vld [vmem:[%s5144_s3 + $0x10] sm:$0xff]  }
  0x1b   :  { %3525 = vmatpush3.bf16.msra.mxu0 %v4048_v7  ;;  %3664 = vmatprep.subr.bf16.mxu1 %v4235_v34  ;;  %v4116_v7 = vld [vmem:[%s5144_s3 + $0x1a8] sm:$0xff]  }
  0x1c   :  { %3526 = vmatprep.subr.bf16.mxu0 %v4049_v8 }
  0x1e   :  { %3665 = vmatpush3.bf16.msra.mxu1 %v4103_v42 }
  0x1f   :  { %3527 = vmatpush3.bf16.msra.mxu0 %v4049_v8  ;;  %3666 = vmatprep.subr.bf16.mxu1 %v4235_v34  ;;  %v4118_v8 = vld [vmem:[%s5144_s3 + $0x1b0] sm:$0xff]  }
  0x20   :  { %3560 = vmatprep.subr.bf16.mxu0 %v4052_v9 }
  0x22   :  { %3529 = vmatmul.mubr.bf16.vlgmr.msra.gmra.mrb[0].mxu0 %v4303_v10  ;;  %3667 = vmatpush3.bf16.msra.mxu1 %v4104_v44 }
  0x23   :  { %3561 = vmatpush3.bf16.msra.mxu0 %v4052_v9  ;;  %3532 = vmatprep.mubr.bf16.mxu0 %v4308_v11  ;;  %v4120_v9 = vld [vmem:[%s5144_s3 + $0x1b8] sm:$0xff]  }
  0x24   :  { %3562 = vmatprep.subr.bf16.mxu0 %v4055_v12  ;;  %3668 = vmatprep.subr.bf16.mxu1 %v4235_v34 }
  0x26   :  { %3669 = vmatpush3.bf16.msra.mxu1 %v4105_v0  ;;  %v4119_v0 = vld [vmem:[%s5144_s3 + $0x28] sm:$0xff]  }
  0x27   :  { %3563 = vmatpush3.bf16.msra.mxu0 %v4055_v12  ;;  %3670 = vmatprep.subr.bf16.mxu1 %v4235_v34 }
  0x28   :  { %3564 = vmatprep.subr.bf16.mxu0 %v4058_v13 }
  0x2a   :  { %3533 = vmatmul.mubr.bf16.gmra.mrb[4].mxu0 %v4321_v14  ;;  %3671 = vmatpush3.bf16.msra.mxu1 %v4107_v2 }
  0x2b   :  { %3536 = vmatprep.mubr.bf16.mxu0 %v4326_v15  ;;  %3565 = vmatpush3.bf16.msra.mxu0 %v4058_v13 }
  0x2c   :  { %3566 = vmatprep.subr.bf16.mxu0 %v4061_v16  ;;  %3676 = vmatprep.subr.bf16.mxu1 %v4235_v34 }
  0x2f   :  { %3567 = vmatpush3.bf16.msra.mxu0 %v4061_v16 }
  0x30   :  { %3568 = vmatprep.subr.bf16.mxu0 %v4064_v18 }
  0x32   :  { %3537 = vmatmul.mubr.bf16.gmra.mrb[8].mxu0 %v4336_v17 }
  0x33   :  { %3540 = vmatprep.mubr.bf16.mxu0 %v4344_v19  ;;  %3569 = vmatpush3.bf16.msra.mxu0 %v4064_v18 }
  0x34   :  { %3570 = vmatprep.subr.bf16.mxu0 %v4067_v20 }
  0x37   :  { %3571 = vmatpush3.bf16.msra.mxu0 %v4067_v20 }
  0x38   :  { %3572 = vmatprep.subr.bf16.mxu0 %v4070_v21 }
  0x3a   :  { %3541 = vmatmul.mubr.bf16.gmra.mrb[12].mxu0 %v4357_v22 }
  0x3b   :  { %3544 = vmatprep.mubr.bf16.mxu0 %v4362_v23  ;;  %3573 = vmatpush3.bf16.msra.mxu0 %v4070_v21 }
  0x3c   :  { %3574 = vmatprep.subr.bf16.mxu0 %v4073_v24 }
  0x3f   :  { %3575 = vmatpush3.bf16.msra.mxu0 %v4073_v24 }
  0x40   :  { %3608 = vmatprep.subr.bf16.mxu0 %v4075_v25 }
  0x42   :  { %3545 = vmatmul.mubr.bf16.gmra.mrb[16].mxu0 %v4375_v26 }
  0x43   :  { %3548 = vmatprep.mubr.bf16.mxu0 %v4380_v27 }
  0x4a   :  { %3549 = vmatmul.mubr.bf16.gmra.mrb[20].mxu0 %v4387_v28 }
  0x4b   :  { %3552 = vmatprep.mubr.bf16.mxu0 %v4392_v29 }
  0x52   :  { %3553 = vmatmul.mubr.bf16.gmra.mrb[24].mxu0 %v4399_v30 }
  0x53   :  { %3556 = vmatprep.mubr.bf16.mxu0 %v4404_v31 }
  0x5a   :  { %3557 = vmatmul.mubr.bf16.gmra.mrb[28].mxu0 %v4072_v32 }
  0x5b   :  { %3576 = vmatprep.mubr.bf16.mxu0 %v4074_v33 }
  0x62   :  { %3577 = vmatmul.mubr.bf16.vlgmr.msra.gmra.mrb[0].mxu0 %v4282_v4  ;;  %v4110_v4 = vld [vmem:[%s5144_s3 + $0x190] sm:$0xff]  }
  0x63   :  { %3609 = vmatpush3.bf16.msra.mxu0 %v4075_v25  ;;  %3580 = vmatprep.mubr.bf16.mxu0 %v4303_v10  ;;  %v4571_v10 = vld [vmem:[%s5145_s2] ss:$0 sm:$0xff] }
  0x64   :  { %3610 = vmatprep.subr.bf16.mxu0 %v4076_v37 }
  0x67   :  { %3611 = vmatpush3.bf16.msra.mxu0 %v4076_v37 }
  0x68   :  { %3612 = vmatprep.subr.bf16.mxu0 %v4077_v39 }
  0x6a   :  { %3581 = vmatmul.mubr.bf16.gmra.mrb[4].mxu0 %v4308_v11 }
  0x6b   :  { %3584 = vmatprep.mubr.bf16.mxu0 %v4321_v14  ;;  %3613 = vmatpush3.bf16.msra.mxu0 %v4077_v39 }
  0x6c   :  { %3614 = vmatprep.subr.bf16.mxu0 %v4078_v41 }
  0x6f   :  { %3615 = vmatpush3.bf16.msra.mxu0 %v4078_v41 }
  0x70   :  { %3616 = vmatprep.subr.bf16.mxu0 %v4079_v43 }
  0x72   :  { %3585 = vmatmul.mubr.bf16.gmra.mrb[8].mxu0 %v4326_v15 }
  0x73   :  { %3588 = vmatprep.mubr.bf16.mxu0 %v4336_v17  ;;  %3617 = vmatpush3.bf16.msra.mxu0 %v4079_v43 }
  0x74   :  { %3618 = vmatprep.subr.bf16.mxu0 %v4080_v45 }
  0x77   :  { %3619 = vmatpush3.bf16.msra.mxu0 %v4080_v45 }
  0x78   :  { %3620 = vmatprep.subr.bf16.mxu0 %v4081_v46 }
  0x7a   :  { %3589 = vmatmul.mubr.bf16.gmra.mrb[12].mxu0 %v4344_v19 }
  0x7b   :  { %3592 = vmatprep.mubr.bf16.mxu0 %v4357_v22  ;;  %3621 = vmatpush3.bf16.msra.mxu0 %v4081_v46 }
  0x7c   :  { %3622 = vmatprep.subr.bf16.mxu0 %v4082_v47 }
  0x7f   :  { %3623 = vmatpush3.bf16.msra.mxu0 %v4082_v47 }
  0x80   :  { %3776 = vmatprep.subr.bf16.mxu0 %v4235_v34 }
  0x82   :  { %3593 = vmatmul.mubr.bf16.gmra.mrb[16].mxu0 %v4362_v23  ;;  %v4109_v23 = vld [vmem:[%s5144_s3] sm:$0xff]  }
  0x83   :  { %3596 = vmatprep.mubr.bf16.mxu0 %v4375_v26 }
  0x8a   :  { %3597 = vmatmul.mubr.bf16.gmra.mrb[20].mxu0 %v4380_v27 }
  0x8b   :  { %3600 = vmatprep.mubr.bf16.mxu0 %v4387_v28 }
  0x92   :  { %3601 = vmatmul.mubr.bf16.gmra.mrb[24].mxu0 %v4392_v29 }
  0x93   :  { %3604 = vmatprep.mubr.bf16.mxu0 %v4399_v30 }
  0x9a   :  { %3605 = vmatmul.mubr.bf16.gmra.mrb[28].mxu0 %v4404_v31  ;;  %v4111_v31 = vld [vmem:[%s5144_s3 + $0x8] sm:$0xff]  }
  0x9b   :  { %3624 = vmatprep.mubr.bf16.mxu0 %v4083_v48  ;;  %v4115_v48 = vld [vmem:[%s5144_s3 + $0x18] sm:$0xff]  }
  0xa2   :  { %3625 = vmatmul.mubr.bf16.vlgmr.msra.gmra.mrb[0].mxu0 %v4084_v49 }
  0xa3   :  { %3628 = vmatprep.mubr.bf16.mxu0 %v4085_v50  ;;  %3777 = vmatpush3.bf16.msra.mxu0 %v4106_v1 }
  0xa4   :  { %3778 = vmatprep.subr.bf16.mxu0 %v4235_v34 }
  0xa7   :  { %3779 = vmatpush3.bf16.msra.mxu0 %v4108_v3 }
  0xa8   :  { %3780 = vmatprep.subr.bf16.mxu0 %v4235_v34 }
  0xaa   :  { %3629 = vmatmul.mubr.bf16.gmra.mrb[4].mxu0 %v4086_v51 }
  0xab   :  { %3632 = vmatprep.mubr.bf16.mxu0 %v4087_v52  ;;  %3781 = vmatpush3.bf16.msra.mxu0 %v4110_v4 }
  0xac   :  { %3782 = vmatprep.subr.bf16.mxu0 %v4235_v34 }
  0xaf   :  { %3783 = vmatpush3.bf16.msra.mxu0 %v4112_v5 }
  0xb0   :  { %3784 = vmatprep.subr.bf16.mxu0 %v4235_v34 }
  0xb2   :  { %3633 = vmatmul.mubr.bf16.gmra.mrb[8].mxu0 %v4088_v53 }
  0xb3   :  { %3636 = vmatprep.mubr.bf16.mxu0 %v4089_v54  ;;  %3785 = vmatpush3.bf16.msra.mxu0 %v4114_v6 }
  0xb4   :  { %3786 = vmatprep.subr.bf16.mxu0 %v4235_v34 }
  0xb7   :  { %3787 = vmatpush3.bf16.msra.mxu0 %v4116_v7 }
  0xb8   :  { %3788 = vmatprep.subr.bf16.mxu0 %v4235_v34 }
  0xba   :  { %3637 = vmatmul.mubr.bf16.gmra.mrb[12].mxu0 %v4090_v55 }
  0xbb   :  { %3640 = vmatprep.mubr.bf16.mxu0 %v4091_v56  ;;  %3789 = vmatpush3.bf16.msra.mxu0 %v4118_v8  ;;  %v4117_v56 = vld [vmem:[%s5144_s3 + $0x20] sm:$0xff]   ;;  %v4121_v8 = vld [vmem:[%s5144_s3 + $0x30] sm:$0xff]  }
  0xbc   :  { %3790 = vmatprep.subr.bf16.mxu0 %v4235_v34 }
  0xbf   :  { %3791 = vmatpush3.bf16.msra.mxu0 %v4120_v9 }
  0xc0   :  { %3816 = vmatprep.subr.bf16.mxu0 %v4235_v34 }
  0xc2   :  { %3641 = vmatmul.mubr.bf16.gmra.mrb[16].mxu0 %v4092_v57 }
  0xc3   :  { %3644 = vmatprep.mubr.bf16.mxu0 %v4093_v58 }
  0xca   :  { %3645 = vmatmul.mubr.bf16.gmra.mrb[20].mxu0 %v4094_v59 }
  0xcb   :  { %3648 = vmatprep.mubr.bf16.mxu0 %v4095_v60 }
  0xd2   :  { %3649 = vmatmul.mubr.bf16.gmra.mrb[24].mxu0 %v4096_v61 }
  0xd3   :  { %3652 = vmatprep.mubr.bf16.mxu0 %v4097_v62 }
  0xda   :  { %3653 = vmatmul.mubr.bf16.gmra.mrb[28].mxu0 %v4098_v63 }
  0xdb   :  { %3792 = vmatprep.mubr.msk.bf16.mxu0 %vm4236_vm0, %v4235_v34 }
 0x175   :  { %v3626_v11 = vpop.f32.mrb[0].mxu0 }
 0x176   :  { %v1003_v12 = vadd.f32 %v3626_v11, %v4571_v10  ;;  %v835_v13 = vpop.f32.mrb[1].mxu0  ;;  %v4122_v11 = vld [vmem:[%s5144_s3 + $0x200] sm:$0xff]  }
 0x177   :  { %v1001_v14 = vadd.f32 %v4571_v10, %v835_v13  ;;  %v3627_v15 = vpop.f32.mrb[2].mxu0 }
 0x178   :  { %v1004_v16 = vadd.f32 %v3627_v15, %v4571_v10  ;;  %v838_v17 = vpop.f32.mrb[3].mxu0  ;;  %v1035_v19 = vmax.f32 %v1003_v12, 0.0 }
 0x179   :  { %v1002_v18 = vadd.f32 %v4571_v10, %v838_v17  ;;  %v1033_v21 = vmax.f32 %v1001_v14, 0.0 }
 0x17a   :  { %v1036_v20 = vmax.f32 %v1004_v16, 0.0 }
 0x17b   :  { %v1034_v22 = vmax.f32 %v1002_v18, 0.0  ;;  %v4123_v18 = vld [vmem:[%s5144_s3 + $0x38] sm:$0xff]  }
 0x17c   :  { %v1066_v24 = vpack.c.bf16 %v1036_v20, %v1035_v19 }
 0x17d   :  { %v4580_v25 = vpack.c.bf16 %v1034_v22, %v1033_v21  ;;  %v3630_v26 = vpop.f32.mrb[4].mxu0  ;;  %v4124_v21 = vld [vmem:[%s5144_s3 + $0x208] sm:$0xff]  }
 0x17e   :  { %v1007_v27 = vadd.f32 %v3630_v26, %v4571_v10  ;;  %v851_v28 = vpop.f32.mrb[5].mxu0  ;;  %3673 = vmatmul.mubr.bf16.vlgmr.msra.gmra.mrb[0].mxu1 %v1066_v24 }
 0x17f   :  { %v1005_v29 = vadd.f32 %v4571_v10, %v851_v28  ;;  %3677 = vmatpush3.bf16.msra.mxu1 %v4109_v23  ;;  %v3631_v30 = vpop.f32.mrb[6].mxu0  ;;  %3692 = vmatprep.mubr.msk.bf16.mxu1 %vm4236_vm0, %v4235_v34  ;;  %v4125_v28 = vld [vmem:[%s5144_s3 + $0x80] sm:$0xff]  }
 0x180   :  { %v1008_v32 = vadd.f32 %v3631_v30, %v4571_v10  ;;  %v854_v33 = vpop.f32.mrb[7].mxu0  ;;  %3678 = vmatprep.subr.bf16.mxu1 %v4235_v34  ;;  %v1039_v36 = vmax.f32 %v1007_v27, 0.0  ;;  %v4126_v30 = vld [vmem:[%s5144_s3 + $0x210] sm:$0xff]  }
 0x181   :  { %v1006_v35 = vadd.f32 %v4571_v10, %v854_v33  ;;  %v1037_v38 = vmax.f32 %v1005_v29, 0.0 }
 0x182   :  { %v1040_v37 = vmax.f32 %v1008_v32, 0.0 }
 0x183   :  { %v1038_v39 = vmax.f32 %v1006_v35, 0.0  ;;  %3679 = vmatpush3.bf16.msra.mxu1 %v4111_v31 }
 0x184   :  { %v4595_v41 = vpack.c.bf16 %v1040_v37, %v1039_v36  ;;  %3680 = vmatprep.subr.bf16.mxu1 %v4235_v34 }
 0x185   :  { %v4598_v42 = vpack.c.bf16 %v1038_v39, %v1037_v38  ;;  %v3634_v43 = vpop.f32.mrb[8].mxu0  ;;  %v4127_v38 = vld [vmem:[%s5144_s3 + $0x88] sm:$0xff]  }
 0x186   :  { %v1011_v44 = vadd.f32 %v3634_v43, %v4571_v10  ;;  %v867_v45 = vpop.f32.mrb[9].mxu0 }
 0x187   :  { %v1009_v46 = vadd.f32 %v4571_v10, %v867_v45  ;;  %3681 = vmatpush3.bf16.msra.mxu1 %v4113_v40  ;;  %v3635_v47 = vpop.f32.mrb[10].mxu0 }
 0x188   :  { %v1012_v49 = vadd.f32 %v3635_v47, %v4571_v10  ;;  %v870_v50 = vpop.f32.mrb[11].mxu0  ;;  %3682 = vmatprep.subr.bf16.mxu1 %v4235_v34  ;;  %v1043_v52 = vmax.f32 %v1011_v44, 0.0 }
 0x189   :  { %v1010_v51 = vadd.f32 %v4571_v10, %v870_v50  ;;  %v1041_v54 = vmax.f32 %v1009_v46, 0.0  ;;  %v4130_v50 = vld [vmem:[%s5144_s3 + $0x220] sm:$0xff]  }
 0x18a   :  { %v1044_v53 = vmax.f32 %v1012_v49, 0.0 }
 0x18b   :  { %v1042_v55 = vmax.f32 %v1010_v51, 0.0  ;;  %3683 = vmatpush3.bf16.msra.mxu1 %v4115_v48  ;;  %v4129_v48 = vld [vmem:[%s5144_s3 + $0x90] sm:$0xff]  }
 0x18c   :  { %v4611_v57 = vpack.c.bf16 %v1044_v53, %v1043_v52  ;;  %3684 = vmatprep.subr.bf16.mxu1 %v4235_v34 }
 0x18d   :  { %v4614_v58 = vpack.c.bf16 %v1042_v55, %v1041_v54  ;;  %v3638_v59 = vpop.f32.mrb[12].mxu0 }
 0x18e   :  { %v1015_v60 = vadd.f32 %v3638_v59, %v4571_v10  ;;  %v883_v61 = vpop.f32.mrb[13].mxu0  ;;  %v4131_v59 = vld [vmem:[%s5144_s3 + $0x98] sm:$0xff]  }
 0x18f   :  { %v1013_v62 = vadd.f32 %v4571_v10, %v883_v61  ;;  %3685 = vmatpush3.bf16.msra.mxu1 %v4117_v56  ;;  %v3639_v63 = vpop.f32.mrb[14].mxu0 }
 0x190   :  { %v1016_v1 = vadd.f32 %v3639_v63, %v4571_v10  ;;  %v886_v2 = vpop.f32.mrb[15].mxu0  ;;  %3686 = vmatprep.subr.bf16.mxu1 %v4235_v34  ;;  %v1047_v4 = vmax.f32 %v1015_v60, 0.0 }
 0x191   :  { %v1014_v3 = vadd.f32 %v4571_v10, %v886_v2  ;;  %v1045_v6 = vmax.f32 %v1013_v62, 0.0  ;;  %v4132_v62 = vld [vmem:[%s5144_s3 + $0x228] sm:$0xff]  }
 0x192   :  { %v1048_v5 = vmax.f32 %v1016_v1, 0.0 }
 0x193   :  { %v1046_v7 = vmax.f32 %v1014_v3, 0.0  ;;  %3687 = vmatpush3.bf16.msra.mxu1 %v4119_v0 }
 0x194   :  { %v4627_v9 = vpack.c.bf16 %v1048_v5, %v1047_v4  ;;  %3688 = vmatprep.subr.bf16.mxu1 %v4235_v34  ;;  %v4133_v4 = vld [vmem:[%s5144_s3 + $0xa0] sm:$0xff]  }
 0x195   :  { %v1071_v12 = vpack.c.bf16 %v1046_v7, %v1045_v6  ;;  %v3642_v13 = vpop.f32.mrb[16].mxu0  ;;  %v4134_v6 = vld [vmem:[%s5144_s3 + $0x230] sm:$0xff]  }
 0x196   :  { %v1019_v14 = vadd.f32 %v3642_v13, %v4571_v10  ;;  %v899_v15 = vpop.f32.mrb[17].mxu0 }
 0x197   :  { %v1017_v16 = vadd.f32 %v4571_v10, %v899_v15  ;;  %3689 = vmatpush3.bf16.msra.mxu1 %v4121_v8  ;;  %v3643_v17 = vpop.f32.mrb[18].mxu0  ;;  %3793 = vmatmul.mubr.bf16.vlgmr.msra.gmra.mrb[32].mxu0 %v1071_v12  ;;  %v4135_v15 = vld [vmem:[%s5144_s3 + $0xa8] sm:$0xff]  }
 0x198   :  { %v1020_v19 = vadd.f32 %v3643_v17, %v4571_v10  ;;  %3817 = vmatpush3.bf16.msra.mxu0 %v4122_v11  ;;  %v902_v20 = vpop.f32.mrb[19].mxu0  ;;  %3690 = vmatprep.subr.bf16.mxu1 %v4235_v34  ;;  %v1051_v23 = vmax.f32 %v1019_v14, 0.0 }
 0x199   :  { %v1018_v22 = vadd.f32 %v4571_v10, %v902_v20  ;;  %3818 = vmatprep.subr.bf16.mxu0 %v4235_v34  ;;  %3832 = vmatprep.mubr.msk.bf16.mxu0 %vm4236_vm0, %v4235_v34  ;;  %v1049_v26 = vmax.f32 %v1017_v16, 0.0 }
 0x19a   :  { %v1052_v24 = vmax.f32 %v1020_v19, 0.0 }
 0x19b   :  { %v1050_v27 = vmax.f32 %v1018_v22, 0.0  ;;  %3691 = vmatpush3.bf16.msra.mxu1 %v4123_v18  ;;  %v4136_v18 = vld [vmem:[%s5144_s3 + $0x238] sm:$0xff]  }
 0x19c   :  { %v4650_v29 = vpack.c.bf16 %v1052_v24, %v1051_v23  ;;  %3819 = vmatpush3.bf16.msra.mxu0 %v4124_v21  ;;  %3696 = vmatprep.subr.bf16.mxu1 %v4235_v34  ;;  %v4137_v24 = vld [vmem:[%s5144_s3 + $0xb0] sm:$0xff]  }
 0x19d   :  { %v4656_v31 = vpack.c.bf16 %v1050_v27, %v1049_v26  ;;  %v3646_v32 = vpop.f32.mrb[20].mxu0  ;;  %3820 = vmatprep.subr.bf16.mxu0 %v4235_v34 }
 0x19e   :  { %v1023_v33 = vadd.f32 %v3646_v32, %v4571_v10  ;;  %3693 = vmatmul.mubr.bf16.vlgmr.msra.gmra.mrb[4].mxu1 %v4580_v25  ;;  %v915_v35 = vpop.f32.mrb[21].mxu0  ;;  %v4128_v25 = vld [vmem:[%s5144_s3 + $0x218] sm:$0xff]   ;;  %v4142_v32 = vld [vmem:[%s5144_s3 + $0x290] sm:$0xff]  }
 0x19f   :  { %v1021_v36 = vadd.f32 %v4571_v10, %v915_v35  ;;  %3697 = vmatpush3.bf16.msra.mxu1 %v4125_v28  ;;  %v3647_v37 = vpop.f32.mrb[22].mxu0  ;;  %3712 = vmatprep.mubr.msk.bf16.mxu1 %vm4236_vm0, %v4235_v34  ;;  %v4139_v28 = vld [vmem:[%s5144_s3 + $0xb8] sm:$0xff]  }
 0x1a0   :  { %v1024_v39 = vadd.f32 %v3647_v37, %v4571_v10  ;;  %3821 = vmatpush3.bf16.msra.mxu0 %v4126_v30  ;;  %v918_v40 = vpop.f32.mrb[23].mxu0  ;;  %3698 = vmatprep.subr.bf16.mxu1 %v4235_v34  ;;  %v1055_v44 = vmax.f32 %v1023_v33, 0.0  ;;  %v4140_v30 = vld [vmem:[%s5144_s3 + $0x288] sm:$0xff]   ;;  %v4144_v35 = vld [vmem:[%s5144_s3 + $0x298] sm:$0xff]  }
 0x1a1   :  { %v1022_v43 = vadd.f32 %v4571_v10, %v918_v40  ;;  %3822 = vmatprep.subr.bf16.mxu0 %v4235_v34  ;;  %v1053_v46 = vmax.f32 %v1021_v36, 0.0  ;;  %v4143_v33 = vld [vmem:[%s5144_s3 + $0xc8] sm:$0xff]   ;;  %v4146_v36 = vld [vmem:[%s5144_s3 + $0x2a0] sm:$0xff]   ;;  %v4147_v37 = vld [vmem:[%s5144_s3 + $0xd8] sm:$0xff]  }
 0x1a2   :  { %v1056_v45 = vmax.f32 %v1024_v39, 0.0  ;;  %v4149_v39 = vld [vmem:[%s5144_s3 + $0xe0] sm:$0xff]   ;;  %v4150_v40 = vld [vmem:[%s5144_s3 + $0x2b0] sm:$0xff]  }
 0x1a3   :  { %v1054_v47 = vmax.f32 %v1022_v43, 0.0  ;;  %3699 = vmatpush3.bf16.msra.mxu1 %v4127_v38  ;;  %v4148_v38 = vld [vmem:[%s5144_s3 + $0x2a8] sm:$0xff]   ;;  %v4152_v43 = vld [vmem:[%s5144_s3 + $0x2b8] sm:$0xff]  }
 0x1a4   :  { %v4677_v49 = vpack.c.bf16 %v1056_v45, %v1055_v44  ;;  %3823 = vmatpush3.bf16.msra.mxu0 %v4128_v25  ;;  %3700 = vmatprep.subr.bf16.mxu1 %v4235_v34  ;;  %v4151_v25 = vld [vmem:[%s5144_s3 + $0xe8] sm:$0xff]   ;;  %v4153_v44 = vld [vmem:[%s5144_s3 + $0xf0] sm:$0xff]   ;;  %v4154_v45 = vld [vmem:[%s5144_s3 + $0x300] sm:$0xff]  }
 0x1a5   :  { %v4683_v51 = vpack.c.bf16 %v1054_v47, %v1053_v46  ;;  %v3650_v52 = vpop.f32.mrb[24].mxu0  ;;  %3824 = vmatprep.subr.bf16.mxu0 %v4235_v34  ;;  %v4155_v46 = vld [vmem:[%s5144_s3 + $0xf8] sm:$0xff]   ;;  %v4156_v47 = vld [vmem:[%s5144_s3 + $0x308] sm:$0xff]  }
 0x1a6   :  { %v1027_v53 = vadd.f32 %v3650_v52, %v4571_v10  ;;  %v931_v54 = vpop.f32.mrb[25].mxu0  ;;  %v4160_v52 = vld [vmem:[%s5144_s3 + $0x318] sm:$0xff]  }
 0x1a7   :  { %v1025_v55 = vadd.f32 %v4571_v10, %v931_v54  ;;  %3701 = vmatpush3.bf16.msra.mxu1 %v4129_v48  ;;  %v3651_v56 = vpop.f32.mrb[26].mxu0  ;;  %v4157_v48 = vld [vmem:[%s5144_s3 + $0x100] sm:$0xff]   ;;  %v4163_v54 = vld [vmem:[%s5144_s3 + $0x118] sm:$0xff]  }
 0x1a8   :  { %v1028_v60 = vadd.f32 %v3651_v56, %v4571_v10  ;;  %3825 = vmatpush3.bf16.msra.mxu0 %v4130_v50  ;;  %v934_v61 = vpop.f32.mrb[27].mxu0  ;;  %3702 = vmatprep.subr.bf16.mxu1 %v4235_v34  ;;  %v1059_v0 = vmax.f32 %v1027_v53, 0.0  ;;  %v4158_v50 = vld [vmem:[%s5144_s3 + $0x310] sm:$0xff]   ;;  %v4162_v53 = vld [vmem:[%s5144_s3 + $0x320] sm:$0xff]  }
 0x1a9   :  { %v1026_v63 = vadd.f32 %v4571_v10, %v934_v61  ;;  %3826 = vmatprep.subr.bf16.mxu0 %v4235_v34  ;;  %v1057_v2 = vmax.f32 %v1025_v55, 0.0  ;;  %v4164_v55 = vld [vmem:[%s5144_s3 + $0x328] sm:$0xff]   ;;  %v4165_v56 = vld [vmem:[%s5144_s3 + $0x120] sm:$0xff]   ;;  %v4168_v61 = vld [vmem:[%s5144_s3 + $0x338] sm:$0xff]  }
 0x1aa   :  { %v1060_v1 = vmax.f32 %v1028_v60, 0.0  ;;  %v4167_v60 = vld [vmem:[%s5144_s3 + $0x128] sm:$0xff]  }
 0x1ab   :  { %v1058_v3 = vmax.f32 %v1026_v63, 0.0  ;;  %3703 = vmatpush3.bf16.msra.mxu1 %v4131_v59  ;;  %v4166_v59 = vld [vmem:[%s5144_s3 + $0x330] sm:$0xff]   ;;  %v4170_v63 = vld [vmem:[%s5144_s3 + $0x380] sm:$0xff]  }
 0x1ac   :  { %v4701_v5 = vpack.c.bf16 %v1060_v1, %v1059_v0  ;;  %3827 = vmatpush3.bf16.msra.mxu0 %v4132_v62  ;;  %3704 = vmatprep.subr.bf16.mxu1 %v4235_v34  ;;  %v4169_v62 = vld [vmem:[%s5144_s3 + $0x130] sm:$0xff]   ;;  %v4171_v0 = vld [vmem:[%s5144_s3 + $0x138] sm:$0xff]   ;;  %v4172_v1 = vld [vmem:[%s5144_s3 + $0x388] sm:$0xff]  }
 0x1ad   :  { %v4707_v7 = vpack.c.bf16 %v1058_v3, %v1057_v2  ;;  %v3654_v8 = vpop.f32.mrb[28].mxu0  ;;  %3828 = vmatprep.subr.bf16.mxu0 %v4235_v34  ;;  %v4173_v2 = vld [vmem:[%s5144_s3 + $0x140] sm:$0xff]   ;;  %v4174_v3 = vld [vmem:[%s5144_s3 + $0x390] sm:$0xff]  }
 0x1ae   :  { %v1031_v11 = vadd.f32 %v3654_v8, %v4571_v10  ;;  %v947_v12 = vpop.f32.mrb[29].mxu0  ;;  %v4179_v8 = vld [vmem:[%s5144_s3 + $0x158] sm:$0xff]  }
 0x1af   :  { %v1029_v13 = vadd.f32 %v4571_v10, %v947_v12  ;;  %3705 = vmatpush3.bf16.msra.mxu1 %v4133_v4  ;;  %v3655_v14 = vpop.f32.mrb[30].mxu0  ;;  %v4175_v4 = vld [vmem:[%s5144_s3 + $0x148] sm:$0xff]   ;;  %v4181_v12 = vld [vmem:[%s5144_s3 + $0x160] sm:$0xff]  }
 0x1b0   :  { %v1032_v16 = vadd.f32 %v3655_v14, %v4571_v10  ;;  %3829 = vmatpush3.bf16.msra.mxu0 %v4134_v6  ;;  %v950_v17 = vpop.f32.mrb[31].mxu0  ;;  %3706 = vmatprep.subr.bf16.mxu1 %v4235_v34  ;;  %v1063_v20 = vmax.f32 %v1031_v11, 0.0  ;;  %v4176_v6 = vld [vmem:[%s5144_s3 + $0x398] sm:$0xff]   ;;  %v4180_v11 = vld [vmem:[%s5144_s3 + $0x3a8] sm:$0xff]  }
 0x1b1   :  { %v1030_v19 = vadd.f32 %v4571_v10, %v950_v17  ;;  %3830 = vmatprep.subr.bf16.mxu0 %v4235_v34  ;;  %v1061_v22 = vmax.f32 %v1029_v13, 0.0  ;;  %v4138_v10 = vld [vmem:[%s5144_s3 + $0x280] sm:$0xff]   ;;  %v4182_v13 = vld [vmem:[%s5144_s3 + $0x3b0] sm:$0xff]   ;;  %v4183_v14 = vld [vmem:[%s5144_s3 + $0x168] sm:$0xff]  }
 0x1b2   :  { %v1064_v21 = vmax.f32 %v1032_v16, 0.0  ;;  %v4185_v16 = vld [vmem:[%s5144_s3 + $0x170] sm:$0xff]   ;;  %v4186_v17 = vld [vmem:[%s5144_s3 + $0x178] sm:$0xff]  }
 0x1b3   :  { %v1062_v23 = vmax.f32 %v1030_v19, 0.0  ;;  %3707 = vmatpush3.bf16.msra.mxu1 %v4135_v15  ;;  %v4184_v15 = vld [vmem:[%s5144_s3 + $0x3b8] sm:$0xff]   ;;  %v4188_v19 = vld [vmem:[%s5144_s3 + $0x1c8] sm:$0xff]  }
 0x1b4   :  { %v4725_v26 = vpack.c.bf16 %v1064_v21, %v1063_v20  ;;  %3831 = vmatpush3.bf16.msra.mxu0 %v4136_v18  ;;  %3708 = vmatprep.subr.bf16.mxu1 %v4235_v34  ;;  %v4187_v18 = vld [vmem:[%s5144_s3 + $0x1c0] sm:$0xff]   ;;  %v4189_v20 = vld [vmem:[%s5144_s3 + $0x1d0] sm:$0xff]  }
 0x1b5   :  { %v4731_v27 = vpack.c.bf16 %v1062_v23, %v1061_v22  ;;  %3856 = vmatprep.subr.bf16.mxu0 %v4235_v34  ;;  %v4191_v21 = vld [vmem:[%s5144_s3 + $0x1e0] sm:$0xff]   ;;  %v4192_v22 = vld [vmem:[%s5144_s3 + $0x1e8] sm:$0xff]   ;;  %v4193_v23 = vld [vmem:[%s5144_s3 + $0x1f0] sm:$0xff]  }
 0x1b7   :  { %3709 = vmatpush3.bf16.msra.mxu1 %v4137_v24  ;;  %3833 = vmatmul.mubr.bf16.vlgmr.msra.gmra.mrb[36].mxu0 %v4656_v31  ;;  %v4141_v31 = vld [vmem:[%s5144_s3 + $0xc0] sm:$0xff]   ;;  %v4194_v24 = vld [vmem:[%s5144_s3 + $0x1f8] sm:$0xff]  }
 0x1b8   :  { %3857 = vmatpush3.bf16.msra.mxu0 %v4138_v10  ;;  %3710 = vmatprep.subr.bf16.mxu1 %v4235_v34  ;;  %v4195_v10 = vld [vmem:[%s5144_s3 + $0x240] sm:$0xff]  }
 0x1b9   :  { %3858 = vmatprep.subr.bf16.mxu0 %v4235_v34  ;;  %3872 = vmatprep.mubr.msk.bf16.mxu0 %vm4236_vm0, %v4235_v34 }
 0x1bb   :  { %3711 = vmatpush3.bf16.msra.mxu1 %v4139_v28  ;;  %v4197_v28 = vld [vmem:[%s5144_s3 + $0x250] sm:$0xff]  }
 0x1bc   :  { %3859 = vmatpush3.bf16.msra.mxu0 %v4140_v30  ;;  %3716 = vmatprep.subr.bf16.mxu1 %v4235_v34  ;;  %v4199_v30 = vld [vmem:[%s5144_s3 + $0x260] sm:$0xff]  }
 0x1bd   :  { %3860 = vmatprep.subr.bf16.mxu0 %v4235_v34 }
 0x1be   :  { %3713 = vmatmul.mubr.bf16.vlgmr.msra.gmra.mrb[8].mxu1 %v4598_v42  ;;  %v4145_v42 = vld [vmem:[%s5144_s3 + $0xd0] sm:$0xff]  }
 0x1bf   :  { %3717 = vmatpush3.bf16.msra.mxu1 %v4141_v31  ;;  %3732 = vmatprep.mubr.msk.bf16.mxu1 %vm4236_vm0, %v4235_v34  ;;  %v4200_v31 = vld [vmem:[%s5144_s3 + $0x268] sm:$0xff]  }
 0x1c0   :  { %3861 = vmatpush3.bf16.msra.mxu0 %v4142_v32  ;;  %3718 = vmatprep.subr.bf16.mxu1 %v4235_v34 }
 0x1c1   :  { %3862 = vmatprep.subr.bf16.mxu0 %v4235_v34 }
 0x1c3   :  { %3719 = vmatpush3.bf16.msra.mxu1 %v4143_v33 }
 0x1c4   :  { %3863 = vmatpush3.bf16.msra.mxu0 %v4144_v35  ;;  %3720 = vmatprep.subr.bf16.mxu1 %v4235_v34 }
 0x1c5   :  { %3864 = vmatprep.subr.bf16.mxu0 %v4235_v34 }
 0x1c7   :  { %3721 = vmatpush3.bf16.msra.mxu1 %v4145_v42  ;;  %v4201_v42 = vld [vmem:[%s5144_s3 + $0x270] sm:$0xff]  }
 0x1c8   :  { %3865 = vmatpush3.bf16.msra.mxu0 %v4146_v36  ;;  %3722 = vmatprep.subr.bf16.mxu1 %v4235_v34 }
 0x1c9   :  { %3866 = vmatprep.subr.bf16.mxu0 %v4235_v34 }
 0x1cb   :  { %3723 = vmatpush3.bf16.msra.mxu1 %v4147_v37  ;;  %v4202_v37 = vld [vmem:[%s5144_s3 + $0x278] sm:$0xff]  }
 0x1cc   :  { %3867 = vmatpush3.bf16.msra.mxu0 %v4148_v38  ;;  %3724 = vmatprep.subr.bf16.mxu1 %v4235_v34  ;;  %v4203_v38 = vld [vmem:[%s5144_s3 + $0x2c0] sm:$0xff]  }
 0x1cd   :  { %3868 = vmatprep.subr.bf16.mxu0 %v4235_v34 }
 0x1cf   :  { %3725 = vmatpush3.bf16.msra.mxu1 %v4149_v39  ;;  %v4204_v39 = vld [vmem:[%s5144_s3 + $0x2c8] sm:$0xff]  }
 0x1d0   :  { %3869 = vmatpush3.bf16.msra.mxu0 %v4150_v40  ;;  %3726 = vmatprep.subr.bf16.mxu1 %v4235_v34  ;;  %v4205_v40 = vld [vmem:[%s5144_s3 + $0x2d0] sm:$0xff]  }
 0x1d1   :  { %3870 = vmatprep.subr.bf16.mxu0 %v4235_v34 }
 0x1d3   :  { %3727 = vmatpush3.bf16.msra.mxu1 %v4151_v25 }
 0x1d4   :  { %3871 = vmatpush3.bf16.msra.mxu0 %v4152_v43  ;;  %3728 = vmatprep.subr.bf16.mxu1 %v4235_v34 }
 0x1d5   :  { %3896 = vmatprep.subr.bf16.mxu0 %v4235_v34 }
 0x1d7   :  { %3729 = vmatpush3.bf16.msra.mxu1 %v4153_v44  ;;  %3873 = vmatmul.mubr.bf16.vlgmr.msra.gmra.mrb[40].mxu0 %v4683_v51  ;;  %v4159_v51 = vld [vmem:[%s5144_s3 + $0x108] sm:$0xff]   ;;  %v4207_v44 = vld [vmem:[%s5144_s3 + $0x2e0] sm:$0xff]  }
 0x1d8   :  { %3897 = vmatpush3.bf16.msra.mxu0 %v4154_v45  ;;  %3730 = vmatprep.subr.bf16.mxu1 %v4235_v34 }
 0x1d9   :  { %3898 = vmatprep.subr.bf16.mxu0 %v4235_v34  ;;  %3912 = vmatprep.mubr.msk.bf16.mxu0 %vm4236_vm0, %v4235_v34 }
 0x1db   :  { %3731 = vmatpush3.bf16.msra.mxu1 %v4155_v46 }
 0x1dc   :  { %3899 = vmatpush3.bf16.msra.mxu0 %v4156_v47  ;;  %3736 = vmatprep.subr.bf16.mxu1 %v4235_v34  ;;  %v4208_v47 = vld [vmem:[%s5144_s3 + $0x2e8] sm:$0xff]  }
 0x1dd   :  { %3900 = vmatprep.subr.bf16.mxu0 %v4235_v34 }
 0x1de   :  { %3733 = vmatmul.mubr.bf16.vlgmr.msra.gmra.mrb[12].mxu1 %v4595_v41  ;;  %v4161_v41 = vld [vmem:[%s5144_s3 + $0x110] sm:$0xff]  }
 0x1df   :  { %3737 = vmatpush3.bf16.msra.mxu1 %v4157_v48  ;;  %3752 = vmatprep.mubr.msk.bf16.mxu1 %vm4236_vm0, %v4235_v34 }
 0x1e0   :  { %3901 = vmatpush3.bf16.msra.mxu0 %v4158_v50  ;;  %3738 = vmatprep.subr.bf16.mxu1 %v4235_v34 }
 0x1e1   :  { %3902 = vmatprep.subr.bf16.mxu0 %v4235_v34 }
 0x1e3   :  { %3739 = vmatpush3.bf16.msra.mxu1 %v4159_v51 }
 0x1e4   :  { %3903 = vmatpush3.bf16.msra.mxu0 %v4160_v52  ;;  %3740 = vmatprep.subr.bf16.mxu1 %v4235_v34 }
 0x1e5   :  { %3904 = vmatprep.subr.bf16.mxu0 %v4235_v34 }
 0x1e7   :  { %3741 = vmatpush3.bf16.msra.mxu1 %v4161_v41  ;;  %v4209_v41 = vld [vmem:[%s5144_s3 + $0x2f0] sm:$0xff]  }
 0x1e8   :  { %3905 = vmatpush3.bf16.msra.mxu0 %v4162_v53  ;;  %3742 = vmatprep.subr.bf16.mxu1 %v4235_v34 }
 0x1e9   :  { %3906 = vmatprep.subr.bf16.mxu0 %v4235_v34 }
 0x1eb   :  { %3743 = vmatpush3.bf16.msra.mxu1 %v4163_v54 }
 0x1ec   :  { %3907 = vmatpush3.bf16.msra.mxu0 %v4164_v55  ;;  %3744 = vmatprep.subr.bf16.mxu1 %v4235_v34  ;;  %v4210_v55 = vld [vmem:[%s5144_s3 + $0x2f8] sm:$0xff]  }
 0x1ed   :  { %3908 = vmatprep.subr.bf16.mxu0 %v4235_v34 }
 0x1ef   :  { %3745 = vmatpush3.bf16.msra.mxu1 %v4165_v56  ;;  %v4211_v56 = vld [vmem:[%s5144_s3 + $0x340] sm:$0xff]  }
 0x1f0   :  { %3909 = vmatpush3.bf16.msra.mxu0 %v4166_v59  ;;  %3746 = vmatprep.subr.bf16.mxu1 %v4235_v34  ;;  %v4212_v59 = vld [vmem:[%s5144_s3 + $0x348] sm:$0xff]  }
 0x1f1   :  { %3910 = vmatprep.subr.bf16.mxu0 %v4235_v34 }
 0x1f3   :  { %3747 = vmatpush3.bf16.msra.mxu1 %v4167_v60  ;;  %v4213_v60 = vld [vmem:[%s5144_s3 + $0x350] sm:$0xff]  }
 0x1f4   :  { %3911 = vmatpush3.bf16.msra.mxu0 %v4168_v61  ;;  %3748 = vmatprep.subr.bf16.mxu1 %v4235_v34 }
 0x1f5   :  { %3936 = vmatprep.subr.bf16.mxu0 %v4235_v34 }
 0x1f7   :  { %3749 = vmatpush3.bf16.msra.mxu1 %v4169_v62  ;;  %3913 = vmatmul.mubr.bf16.vlgmr.msra.gmra.mrb[44].mxu0 %v4707_v7  ;;  %v4178_v7 = vld [vmem:[%s5144_s3 + $0x3a0] sm:$0xff]  }
 0x1f8   :  { %3937 = vmatpush3.bf16.msra.mxu0 %v4170_v63  ;;  %3750 = vmatprep.subr.bf16.mxu1 %v4235_v34  ;;  %v4215_v63 = vld [vmem:[%s5144_s3 + $0x360] sm:$0xff]  }
 0x1f9   :  { %3938 = vmatprep.subr.bf16.mxu0 %v4235_v34  ;;  %3952 = vmatprep.mubr.msk.bf16.mxu0 %vm4236_vm0, %v4235_v34 }
 0x1fb   :  { %3751 = vmatpush3.bf16.msra.mxu1 %v4171_v0 }
 0x1fc   :  { %3939 = vmatpush3.bf16.msra.mxu0 %v4172_v1  ;;  %3756 = vmatprep.subr.bf16.mxu1 %v4235_v34 }
 0x1fd   :  { %3940 = vmatprep.subr.bf16.mxu0 %v4235_v34 }
 0x1fe   :  { %3753 = vmatmul.mubr.bf16.vlgmr.msra.gmra.mrb[16].mxu1 %v4614_v58  ;;  %v4177_v58 = vld [vmem:[%s5144_s3 + $0x150] sm:$0xff]  }
 0x1ff   :  { %3757 = vmatpush3.bf16.msra.mxu1 %v4173_v2  ;;  %3772 = vmatprep.mubr.msk.bf16.mxu1 %vm4236_vm0, %v4235_v34  ;;  %v4216_v2 = vld [vmem:[%s5144_s3 + $0x368] sm:$0xff]  }
 0x200   :  { %3941 = vmatpush3.bf16.msra.mxu0 %v4174_v3  ;;  %3758 = vmatprep.subr.bf16.mxu1 %v4235_v34 }
 0x201   :  { %3942 = vmatprep.subr.bf16.mxu0 %v4235_v34 }
 0x203   :  { %3759 = vmatpush3.bf16.msra.mxu1 %v4175_v4 }
 0x204   :  { %3943 = vmatpush3.bf16.msra.mxu0 %v4176_v6  ;;  %3760 = vmatprep.subr.bf16.mxu1 %v4235_v34 }
 0x205   :  { %3944 = vmatprep.subr.bf16.mxu0 %v4235_v34 }
 0x207   :  { %3761 = vmatpush3.bf16.msra.mxu1 %v4177_v58 }
 0x208   :  { %3945 = vmatpush3.bf16.msra.mxu0 %v4178_v7  ;;  %3762 = vmatprep.subr.bf16.mxu1 %v4235_v34  ;;  %v4217_v7 = vld [vmem:[%s5144_s3 + $0x370] sm:$0xff]  }
 0x209   :  { %3946 = vmatprep.subr.bf16.mxu0 %v4235_v34 }
 0x20b   :  { %3763 = vmatpush3.bf16.msra.mxu1 %v4179_v8 }
 0x20c   :  { %3947 = vmatpush3.bf16.msra.mxu0 %v4180_v11  ;;  %3764 = vmatprep.subr.bf16.mxu1 %v4235_v34 }
 0x20d   :  { %3948 = vmatprep.subr.bf16.mxu0 %v4235_v34 }
 0x20f   :  { %3765 = vmatpush3.bf16.msra.mxu1 %v4181_v12  ;;  %v4218_v12 = vld [vmem:[%s5144_s3 + $0x378] sm:$0xff]  }
 0x210   :  { %3949 = vmatpush3.bf16.msra.mxu0 %v4182_v13  ;;  %3766 = vmatprep.subr.bf16.mxu1 %v4235_v34  ;;  %v4219_v13 = vld [vmem:[%s5144_s3 + $0x3c0] sm:$0xff]  }
 0x211   :  { %3950 = vmatprep.subr.bf16.mxu0 %v4235_v34 }
 0x213   :  { %3767 = vmatpush3.bf16.msra.mxu1 %v4183_v14  ;;  %v4220_v14 = vld [vmem:[%s5144_s3 + $0x3c8] sm:$0xff]  }
 0x214   :  { %3951 = vmatpush3.bf16.msra.mxu0 %v4184_v15  ;;  %3768 = vmatprep.subr.bf16.mxu1 %v4235_v34  ;;  %v4221_v15 = vld [vmem:[%s5144_s3 + $0x3d0] sm:$0xff]  }
 0x217   :  { %3769 = vmatpush3.bf16.msra.mxu1 %v4185_v16  ;;  %3953 = vmatmul.mubr.bf16.vlgmr.msra.gmra.mrb[48].mxu0 %v4731_v27  ;;  %v4196_v27 = vld [vmem:[%s5144_s3 + $0x248] sm:$0xff]  }
 0x218   :  { %3770 = vmatprep.subr.bf16.mxu1 %v4235_v34 }
 0x21b   :  { %3771 = vmatpush3.bf16.msra.mxu1 %v4186_v17 }
 0x21c   :  { %3796 = vmatprep.subr.bf16.mxu1 %v4235_v34 }
 0x21e   :  { %3773 = vmatmul.mubr.bf16.vlgmr.msra.gmra.mrb[20].mxu1 %v4611_v57  ;;  %v4190_v57 = vld [vmem:[%s5144_s3 + $0x1d8] sm:$0xff]  }
 0x21f   :  { %3797 = vmatpush3.bf16.msra.mxu1 %v4187_v18  ;;  %3812 = vmatprep.mubr.msk.bf16.mxu1 %vm4236_vm0, %v4235_v34  ;;  %v4223_v18 = vld [vmem:[%s5144_s3 + $0x3e0] sm:$0xff]  }
 0x220   :  { %3798 = vmatprep.subr.bf16.mxu1 %v4235_v34 }
 0x223   :  { %3799 = vmatpush3.bf16.msra.mxu1 %v4188_v19 }
 0x224   :  { %3800 = vmatprep.subr.bf16.mxu1 %v4235_v34 }
 0x227   :  { %3801 = vmatpush3.bf16.msra.mxu1 %v4189_v20 }
 0x228   :  { %3802 = vmatprep.subr.bf16.mxu1 %v4235_v34 }
 0x22b   :  { %3803 = vmatpush3.bf16.msra.mxu1 %v4190_v57  ;;  %v4224_v57 = vld [vmem:[%s5144_s3 + $0x3e8] sm:$0xff]  }
 0x22c   :  { %3804 = vmatprep.subr.bf16.mxu1 %v4235_v34 }
 0x22f   :  { %3805 = vmatpush3.bf16.msra.mxu1 %v4191_v21 }
 0x230   :  { %3806 = vmatprep.subr.bf16.mxu1 %v4235_v34 }
 0x233   :  { %3807 = vmatpush3.bf16.msra.mxu1 %v4192_v22 }
 0x234   :  { %3808 = vmatprep.subr.bf16.mxu1 %v4235_v34 }
 0x237   :  { %3809 = vmatpush3.bf16.msra.mxu1 %v4193_v23 }
 0x238   :  { %3810 = vmatprep.subr.bf16.mxu1 %v4235_v34 }
 0x23b   :  { %3811 = vmatpush3.bf16.msra.mxu1 %v4194_v24 }
 0x23c   :  { %3836 = vmatprep.subr.bf16.mxu1 %v4235_v34 }
 0x23e   :  { %3813 = vmatmul.mubr.bf16.vlgmr.msra.gmra.mrb[24].mxu1 %v4627_v9  ;;  %v4198_v9 = vld [vmem:[%s5144_s3 + $0x258] sm:$0xff]  }
 0x23f   :  { %3837 = vmatpush3.bf16.msra.mxu1 %v4195_v10  ;;  %3852 = vmatprep.mubr.msk.bf16.mxu1 %vm4236_vm0, %v4235_v34  ;;  %v4225_v10 = vld [vmem:[%s5144_s3 + $0x3f0] sm:$0xff]  }
 0x240   :  { %3838 = vmatprep.subr.bf16.mxu1 %v4235_v34 }
 0x243   :  { %3839 = vmatpush3.bf16.msra.mxu1 %v4196_v27 }
 0x244   :  { %3840 = vmatprep.subr.bf16.mxu1 %v4235_v34 }
 0x247   :  { %3841 = vmatpush3.bf16.msra.mxu1 %v4197_v28 }
 0x248   :  { %3842 = vmatprep.subr.bf16.mxu1 %v4235_v34 }
 0x24b   :  { %3843 = vmatpush3.bf16.msra.mxu1 %v4198_v9  ;;  %v4226_v9 = vld [vmem:[%s5144_s3 + $0x3f8] sm:$0xff]  }
 0x24c   :  { %3844 = vmatprep.subr.bf16.mxu1 %v4235_v34 }
 0x24f   :  { %3845 = vmatpush3.bf16.msra.mxu1 %v4199_v30 }
 0x250   :  { %3846 = vmatprep.subr.bf16.mxu1 %v4235_v34 }
 0x251   :  { %v1196_v32 = vpop.f32.mrb[0].mxu1 }
 0x252   :  { %v3674_v33 = vpop.f32.mrb[1].mxu1 }
 0x253   :  { %3847 = vmatpush3.bf16.msra.mxu1 %v4200_v31  ;;  %v1199_v35 = vpop.f32.mrb[2].mxu1 }
 0x254   :  { %v3675_v36 = vpop.f32.mrb[3].mxu1  ;;  %3848 = vmatprep.subr.bf16.mxu1 %v4235_v34 }
 0x257   :  { %3849 = vmatpush3.bf16.msra.mxu1 %v4201_v42 }
 0x258   :  { %3850 = vmatprep.subr.bf16.mxu1 %v4235_v34 }
 0x25b   :  { %3851 = vmatpush3.bf16.msra.mxu1 %v4202_v37 }
 0x25c   :  { %3876 = vmatprep.subr.bf16.mxu1 %v4235_v34 }
 0x25e   :  { %3853 = vmatmul.mubr.bf16.vlgmr.msra.gmra.mrb[28].mxu1 %v4650_v29  ;;  %v4206_v29 = vld [vmem:[%s5144_s3 + $0x2d8] sm:$0xff]  }
 0x25f   :  { %3877 = vmatpush3.bf16.msra.mxu1 %v4203_v38  ;;  %3892 = vmatprep.mubr.msk.bf16.mxu1 %vm4236_vm0, %v4235_v34 }
 0x260   :  { %3878 = vmatprep.subr.bf16.mxu1 %v4235_v34 }
 0x263   :  { %3879 = vmatpush3.bf16.msra.mxu1 %v4204_v39 }
 0x264   :  { %3880 = vmatprep.subr.bf16.mxu1 %v4235_v34 }
 0x267   :  { %3881 = vmatpush3.bf16.msra.mxu1 %v4205_v40 }
 0x268   :  { %3882 = vmatprep.subr.bf16.mxu1 %v4235_v34 }
 0x26a   :  { %v5034_v25 = vpop.f32.mrb[32].mxu0 }
 0x26b   :  { %3883 = vmatpush3.bf16.msra.mxu1 %v4206_v29  ;;  %v3794_v43 = vpop.f32.mrb[33].mxu0 }
 0x26c   :  { %v5039_v45 = vpop.f32.mrb[34].mxu0  ;;  %3884 = vmatprep.subr.bf16.mxu1 %v4235_v34 }
 0x26d   :  { %v3795_v46 = vpop.f32.mrb[35].mxu0 }
 0x26f   :  { %3885 = vmatpush3.bf16.msra.mxu1 %v4207_v44 }
 0x270   :  { %3886 = vmatprep.subr.bf16.mxu1 %v4235_v34 }
 0x271   :  { %v1285_v48 = vpop.f32.mrb[4].mxu1 }
 0x272   :  { %v1286_v50 = vadd.f32 %v1285_v48, %v1196_v32  ;;  %v3694_v51 = vpop.f32.mrb[5].mxu1 }
 0x273   :  { %v1288_v52 = vpop.f32.mrb[6].mxu1  ;;  %3887 = vmatpush3.bf16.msra.mxu1 %v4208_v47 }
 0x274   :  { %v1289_v53 = vadd.f32 %v1288_v52, %v1199_v35  ;;  %v3695_v54 = vpop.f32.mrb[7].mxu1  ;;  %3888 = vmatprep.subr.bf16.mxu1 %v4235_v34 }
 0x277   :  { %3889 = vmatpush3.bf16.msra.mxu1 %v4209_v41 }
 0x278   :  { %3890 = vmatprep.subr.bf16.mxu1 %v4235_v34 }
 0x27b   :  { %3891 = vmatpush3.bf16.msra.mxu1 %v4210_v55 }
 0x27c   :  { %3916 = vmatprep.subr.bf16.mxu1 %v4235_v34 }
 0x27e   :  { %3893 = vmatmul.mubr.bf16.vlgmr.msra.gmra.mrb[32].mxu1 %v4677_v49  ;;  %v4214_v49 = vld [vmem:[%s5144_s3 + $0x358] sm:$0xff]  }
 0x27f   :  { %3917 = vmatpush3.bf16.msra.mxu1 %v4211_v56  ;;  %3932 = vmatprep.mubr.msk.bf16.mxu1 %vm4236_vm0, %v4235_v34 }
 0x280   :  { %3918 = vmatprep.subr.bf16.mxu1 %v4235_v34 }
 0x283   :  { %3919 = vmatpush3.bf16.msra.mxu1 %v4212_v59 }
 0x284   :  { %3920 = vmatprep.subr.bf16.mxu1 %v4235_v34 }
 0x287   :  { %3921 = vmatpush3.bf16.msra.mxu1 %v4213_v60 }
 0x288   :  { %3922 = vmatprep.subr.bf16.mxu1 %v4235_v34 }
 0x28a   :  { %v5073_v61 = vpop.f32.mrb[36].mxu0 }
 0x28b   :  { %v3834_v62 = vpop.f32.mrb[37].mxu0  ;;  %3923 = vmatpush3.bf16.msra.mxu1 %v4214_v49 }
 0x28c   :  { %v5078_v0 = vpop.f32.mrb[38].mxu0  ;;  %3924 = vmatprep.subr.bf16.mxu1 %v4235_v34 }
 0x28d   :  { %v3835_v1 = vpop.f32.mrb[39].mxu0 }
 0x28f   :  { %3925 = vmatpush3.bf16.msra.mxu1 %v4215_v63 }
 0x290   :  { %3926 = vmatprep.subr.bf16.mxu1 %v4235_v34 }
 0x291   :  { %v1391_v3 = vpop.f32.mrb[8].mxu1 }
 0x292   :  { %v1398_v4 = vadd.f32 %v1391_v3, %v1286_v50  ;;  %v3714_v6 = vpop.f32.mrb[9].mxu1 }
 0x293   :  { %v1394_v58 = vpop.f32.mrb[10].mxu1  ;;  %3927 = vmatpush3.bf16.msra.mxu1 %v4216_v2 }
 0x294   :  { %v1399_v8 = vadd.f32 %v1394_v58, %v1289_v53  ;;  %v3715_v11 = vpop.f32.mrb[11].mxu1  ;;  %3928 = vmatprep.subr.bf16.mxu1 %v4235_v34 }
 0x297   :  { %3929 = vmatpush3.bf16.msra.mxu1 %v4217_v7 }
 0x298   :  { %3930 = vmatprep.subr.bf16.mxu1 %v4235_v34 }
 0x29b   :  { %3931 = vmatpush3.bf16.msra.mxu1 %v4218_v12 }
 0x29c   :  { %3956 = vmatprep.subr.bf16.mxu1 %v4235_v34 }
 0x29e   :  { %3933 = vmatmul.mubr.bf16.vlgmr.msra.gmra.mrb[36].mxu1 %v4701_v5  ;;  %v4222_v5 = vld [vmem:[%s5144_s3 + $0x3d8] sm:$0xff]  }
 0x29f   :  { %3957 = vmatpush3.bf16.msra.mxu1 %v4219_v13  ;;  %3972 = vmatprep.mubr.msk.bf16.mxu1 %vm4236_vm0, %v4235_v34 }
 0x2a0   :  { %3958 = vmatprep.subr.bf16.mxu1 %v4235_v34 }
 0x2a3   :  { %3959 = vmatpush3.bf16.msra.mxu1 %v4220_v14 }
 0x2a4   :  { %3960 = vmatprep.subr.bf16.mxu1 %v4235_v34 }
 0x2a7   :  { %3961 = vmatpush3.bf16.msra.mxu1 %v4221_v15 }
 0x2a8   :  { %3962 = vmatprep.subr.bf16.mxu1 %v4235_v34 }
 0x2aa   :  { %v2255_v16 = vpop.f32.mrb[40].mxu0 }
 0x2ab   :  { %v3874_v17 = vpop.f32.mrb[41].mxu0  ;;  %3963 = vmatpush3.bf16.msra.mxu1 %v4222_v5 }
 0x2ac   :  { %v2258_v19 = vpop.f32.mrb[42].mxu0  ;;  %3964 = vmatprep.subr.bf16.mxu1 %v4235_v34 }
 0x2ad   :  { %v3875_v20 = vpop.f32.mrb[43].mxu0 }
 0x2af   :  { %3965 = vmatpush3.bf16.msra.mxu1 %v4223_v18 }
 0x2b0   :  { %3966 = vmatprep.subr.bf16.mxu1 %v4235_v34 }
 0x2b1   :  { %v1499_v21 = vpop.f32.mrb[12].mxu1 }
 0x2b2   :  { %v1506_v22 = vadd.f32 %v1499_v21, %v1398_v4  ;;  %v3734_v23 = vpop.f32.mrb[13].mxu1 }
 0x2b3   :  { %v1502_v24 = vpop.f32.mrb[14].mxu1  ;;  %3967 = vmatpush3.bf16.msra.mxu1 %v4224_v57 }
 0x2b4   :  { %v1507_v27 = vadd.f32 %v1502_v24, %v1399_v8  ;;  %v3735_v28 = vpop.f32.mrb[15].mxu1  ;;  %3968 = vmatprep.subr.bf16.mxu1 %v4235_v34 }
 0x2b7   :  { %3969 = vmatpush3.bf16.msra.mxu1 %v4225_v10 }
 0x2b8   :  { %3970 = vmatprep.subr.bf16.mxu1 %v4235_v34 }
 0x2bb   :  { %3971 = vmatpush3.bf16.msra.mxu1 %v4226_v9 }
 0x2be   :  { %3973 = vmatmul.mubr.bf16.vlgmr.msra.gmra.mrb[40].mxu1 %v4725_v26 }
 0x2ca   :  { %v2471_v30 = vpop.f32.mrb[44].mxu0 }
 0x2cb   :  { %v3914_v31 = vpop.f32.mrb[45].mxu0 }
 0x2cc   :  { %v2474_v32 = vpop.f32.mrb[46].mxu0 }
 0x2cd   :  { %v3915_v33 = vpop.f32.mrb[47].mxu0 }
 0x2d1   :  { %v1607_v35 = vpop.f32.mrb[16].mxu1 }
 0x2d2   :  { %v1614_v42 = vadd.f32 %v1607_v35, %v1506_v22  ;;  %v3754_v36 = vpop.f32.mrb[17].mxu1 }
 0x2d3   :  { %v1610_v37 = vpop.f32.mrb[18].mxu1 }
 0x2d4   :  { %v1615_v38 = vadd.f32 %v1610_v37, %v1507_v27  ;;  %v3755_v39 = vpop.f32.mrb[19].mxu1 }
 0x2ea   :  { %v2687_v40 = vpop.f32.mrb[48].mxu0 }
 0x2eb   :  { %v3954_v29 = vpop.f32.mrb[49].mxu0 }
 0x2ec   :  { %v2690_v43 = vpop.f32.mrb[50].mxu0 }
 0x2ed   :  { %v3955_v44 = vpop.f32.mrb[51].mxu0 }
 0x2f1   :  { %v1715_v46 = vpop.f32.mrb[20].mxu1 }
 0x2f2   :  { %v1722_v47 = vadd.f32 %v1715_v46, %v1614_v42  ;;  %v3774_v34 = vpop.f32.mrb[21].mxu1 }
 0x2f3   :  { %v1718_v48 = vpop.f32.mrb[22].mxu1 }
 0x2f4   :  { %v1723_v50 = vadd.f32 %v1718_v48, %v1615_v38  ;;  %v3775_v26 = vpop.f32.mrb[23].mxu1  ;;  %v1830_v51 = vadd.f32 %v5034_v25, %v1722_v47 }
 0x2f6   :  { %v1831_v52 = vadd.f32 %v5039_v45, %v1723_v50 }
 0x311   :  { %v1931_v41 = vpop.f32.mrb[24].mxu1 }
 0x312   :  { %v1938_v53 = vadd.f32 %v1931_v41, %v1830_v51  ;;  %v3814_v54 = vpop.f32.mrb[25].mxu1 }
 0x313   :  { %v1934_v55 = vpop.f32.mrb[26].mxu1 }
 0x314   :  { %v1939_v56 = vadd.f32 %v1934_v55, %v1831_v52  ;;  %v3815_v59 = vpop.f32.mrb[27].mxu1  ;;  %v2046_v60 = vadd.f32 %v5073_v61, %v1938_v53 }
 0x316   :  { %v2047_v49 = vadd.f32 %v5078_v0, %v1939_v56 }
 0x331   :  { %v2147_v62 = vpop.f32.mrb[28].mxu1 }
 0x332   :  { %v2154_v63 = vadd.f32 %v2147_v62, %v2046_v60  ;;  %v3854_v1 = vpop.f32.mrb[29].mxu1 }
 0x333   :  { %v2150_v2 = vpop.f32.mrb[30].mxu1 }
 0x334   :  { %v2155_v3 = vadd.f32 %v2150_v2, %v2047_v49  ;;  %v3855_v4 = vpop.f32.mrb[31].mxu1  ;;  %v2262_v6 = vadd.f32 %v2255_v16, %v2154_v63  ;;  %v3295_v16 = vld [vmem:[%s5146_s4] ss:$0 sm:$0xff] }
 0x336   :  { %v2263_v25 = vadd.f32 %v2258_v19, %v2155_v3 }
 0x351   :  { %v2363_v58 = vpop.f32.mrb[32].mxu1 }
 0x352   :  { %v2370_v45 = vadd.f32 %v2363_v58, %v2262_v6  ;;  %v3894_v7 = vpop.f32.mrb[33].mxu1 }
 0x353   :  { %v2366_v8 = vpop.f32.mrb[34].mxu1 }
 0x354   :  { %v2371_v11 = vadd.f32 %v2366_v8, %v2263_v25  ;;  %v3895_v12 = vpop.f32.mrb[35].mxu1  ;;  %v2478_v13 = vadd.f32 %v2471_v30, %v2370_v45 }
 0x356   :  { %v2479_v14 = vadd.f32 %v2474_v32, %v2371_v11 }
 0x371   :  { %v2579_v15 = vpop.f32.mrb[36].mxu1 }
 0x372   :  { %v2586_v61 = vadd.f32 %v2579_v15, %v2478_v13  ;;  %v3934_v5 = vpop.f32.mrb[37].mxu1 }
 0x373   :  { %v2582_v0 = vpop.f32.mrb[38].mxu1 }
 0x374   :  { %v2587_v17 = vadd.f32 %v2582_v0, %v2479_v14  ;;  %v3935_v18 = vpop.f32.mrb[39].mxu1  ;;  %v2694_v20 = vadd.f32 %v2687_v40, %v2586_v61 }
 0x376   :  { %v2695_v57 = vadd.f32 %v2690_v43, %v2587_v17 }
 0x391   :  { %v2795_v21 = vpop.f32.mrb[40].mxu1 }
 0x392   :  { %v2802_v19 = vadd.f32 %v2795_v21, %v2694_v20  ;;  %v3974_v22 = vpop.f32.mrb[41].mxu1 }
 0x393   :  { %v2798_v23 = vpop.f32.mrb[42].mxu1 }
 0x394   :  { %v2803_v24 = vadd.f32 %v2798_v23, %v2695_v57  ;;  %v3975_v10 = vpop.f32.mrb[43].mxu1  ;;  %v2811_v27 = vadd.f32 %v3295_v16, %v2802_v19 }
 0x396   :  { %2813 = vmax.xlane.f32.xlu0 %v2811_v27  ;;  %v2812_v28 = vadd.f32 %v3295_v16, %v2803_v24 }
 0x39a   :  { %2815 = vmax.xlane.f32.xlu0 %v2812_v28 }
 0x423   :  { %v2814_v9 = vpop.xlane.xlu0 %2813 }
 0x424   :  { %v2817_v30 = vsub.f32 %v2811_v27, %v2814_v9 }
 0x426   :  { %v2819_v31 = vmul.f32 1.442695, %v2817_v30 }
 0x427   :  { %v2816_v32 = vpop.xlane.xlu0 %2815 }
 0x428   :  { %4227 = vpow2.f32 %v2819_v31  ;;  %v2818_v33 = vsub.f32 %v2812_v28, %v2816_v32 }
 0x42a   :  { %v2821_v35 = vmul.f32 1.442695, %v2818_v33 }
 0x42c   :  { %4229 = vpow2.f32 %v2821_v35 }
 0x432   :  { %v4228_v42 = vpop.eup %4227 }
 0x433   :  { %2823 = vadd.xlane.f32.xlu1 %v4228_v42 }
 0x436   :  { %v4230_v36 = vpop.eup %4229 }
 0x437   :  { %2825 = vadd.xlane.f32.xlu1 %v4230_v36 }
 0x4c0   :  { %v2824_v37 = vpop.xlane.xlu1 %2823 }
 0x4c1   :  { %4231 = vrcp.f32 %v2824_v37 }
 0x4c4   :  { %v2826_v38 = vpop.xlane.xlu1 %2825 }
 0x4c5   :  { %4233 = vrcp.f32 %v2826_v38 }
 0x4cb   :  { %v4232_v39 = vpop.eup %4231 }
 0x4cc   :  { %v2828_v40 = vmul.f32 %v4232_v39, %v4228_v42 }
 0x4ce   :  { %2831 = vst [vmem:[%s5147_s5] sm:$0xff] %v2828_v40 }
 0x4cf   :  { %v4234_v29 = vpop.eup %4233 }
 0x4d0   :  { %v2830_v43 = vmul.f32 %v4234_v29, %v4230_v36 }
 0x4d2   :  { %2832 = vst [vmem:[%s5147_s5 + $0x8] sm:$0xff] %v2830_v43 }

</bundles_post_ra>
